<compile_context>
chip_gen: v6e
topology: v6e:2x2x1
jax: 0.10.0
libtpu: 0.0.40
codegen_flags: <defaults>
</compile_context>

<pallas_src>
import math

import jax
import jax.numpy as jnp
from jax.experimental import pallas as pl
from jax.experimental.pallas import tpu as pltpu

# ----------------------- problem sizes (small, synthetic) -----------------------
B = 2          # batch
S = 8          # target (decoder) sequence length
SE = 8         # encoder sequence length
D = 32         # d_model
H = 4          # num_heads
HD = D // H    # head_dim
F = 64         # d_ff
EPS = 1e-5     # nn.LayerNorm default eps

NT = B * S     # decoder tokens
NE = B * SE    # encoder tokens
W96 = 3 * D    # fused QKV width; also the lane-padded FFN hidden width (F <= W96)

# Row indices inside the f32 parameter slab (each row is W96 lanes, zero-padded).
_BQKV1, _BQKV2, _BO1, _BO2, _B1, _B2, _G, _BE = 0, 1, 2, 3, 4, 5, 6, 9


# ----------------------------- Pallas kernel ------------------------------------
def decoder_layer_kernel(tok_ref, w96_ref, w32_ref, p_ref, out_ref):
    f32 = jnp.float32
    cdt = jnp.bfloat16                      # MXU compute dtype (f32 accumulation)
    scale = 1.0 / math.sqrt(HD)

    tok = tok_ref[...]                      # (NT+NE, D) f32: decoder tokens then encoder output
    x, enc = tok[:NT], tok[NT:]
    w96 = w96_ref[...]                      # (3D, W96) bf16: [wqkv1; wqkv2; w1 (lane-padded)]
    w32 = w32_ref[...]                      # (2D+W96, D) bf16: [wo1; wo2; w2 (row-padded)]
    p = p_ref[...]                          # (12, W96) f32 biases / LayerNorm params

    def layernorm(z, i):                    # all-f32 elementwise tail (v5e-safe)
        mu = jnp.mean(z, axis=-1, keepdims=True)
        var = jnp.mean(jnp.square(z - mu), axis=-1, keepdims=True)
        return ((z - mu) * jax.lax.rsqrt(var + EPS) * p[_G + i:_G + i + 1, :D]
                + p[_BE + i:_BE + i + 1, :D])

    def softmax(s):                         # f32; reciprocal goes to the otherwise-idle EUP
        m = jnp.max(s, axis=-1, keepdims=True)
        e = jnp.exp(s - m)
        return e * pl.reciprocal(jnp.sum(e, axis=-1, keepdims=True), approx=True)

    def heads(t2d, s_kv):                   # (B*s_kv, D) f32 -> (B*H, s_kv, HD) bf16
        t = t2d.reshape(B, s_kv, H, HD).transpose(0, 2, 1, 3)
        return t.reshape(B * H, s_kv, HD).astype(cdt)

    def mha(q2d, k2d, v2d, s_kv, wo, bo_row):
        qh, kh, vh = heads(q2d, S), heads(k2d, s_kv), heads(v2d, s_kv)
        scores = jnp.einsum("gqd,gkd->gqk", qh, kh,
                            preferred_element_type=f32) * scale       # (B*H, S, s_kv) f32
        # TODO(synk): apply optional src/tgt attention masks (masked_fill -1e9) before softmax.
        probs = softmax(scores)
        ctx = jnp.einsum("gqk,gkd->gqd", probs.astype(cdt), vh,
                         preferred_element_type=f32)                  # (B*H, S, HD) f32
        # Merge heads back to (B*S, D) and do ONE K=D output-projection matmul.
        ctx2d = ctx.reshape(B, H, S, HD).transpose(0, 2, 1, 3).reshape(NT, D)
        return (jnp.dot(ctx2d.astype(cdt), wo, preferred_element_type=f32)
                + p[bo_row:bo_row + 1, :D])

    # ---- 1) self-attention + residual + LayerNorm 1 (dropout = identity) ----
    qkv1 = (jnp.dot(x.astype(cdt), w96[:D], preferred_element_type=f32)
            + p[_BQKV1:_BQKV1 + 1, :])                                # (NT, 3D)
    attn = mha(qkv1[:, :D], qkv1[:, D:2 * D], qkv1[:, 2 * D:], S, w32[:D], _BO1)
    x1 = layernorm(x + attn, 0)

    # ---- 2) cross-attention over encoder output + residual + LayerNorm 2 ----
    # Row-stack trick: [x1; enc] against the full fused (D, 3D) weight — no in-kernel
    # weight slicing; the unused combinations (K/V of x1, Q of enc) are free at this
    # MXU occupancy and the split afterwards is a cheap sublane (row) cut.
    qkv2 = (jnp.dot(jnp.concatenate([x1, enc], axis=0).astype(cdt), w96[D:2 * D],
                    preferred_element_type=f32) + p[_BQKV2:_BQKV2 + 1, :])  # (NT+NE, 3D)
    cross = mha(qkv2[:NT, :D], qkv2[NT:, D:2 * D], qkv2[NT:, 2 * D:], SE,
                w32[D:2 * D], _BO2)
    x2 = layernorm(x1 + cross, 1)

    # ---- 3) feed-forward (Linear -> ReLU -> Linear) + residual + LayerNorm 3 ----
    # Hidden dim lane-padded F -> W96 with zero weight columns / zero bias; the matching
    # zero rows of w2 make the padding inert, so no lane slicing is needed.
    hdn = jnp.maximum(jnp.dot(x2.astype(cdt), w96[2 * D:], preferred_element_type=f32)
                      + p[_B1:_B1 + 1, :], 0.0)                       # (NT, W96)
    ffn = (jnp.dot(hdn.astype(cdt), w32[2 * D:], preferred_element_type=f32)
           + p[_B2:_B2 + 1, :D])                                      # (NT, D)
    x3 = layernorm(x2 + ffn, 2)

    # (NT, D) = (16, 32) output accepts masked lane stores knowingly: a lane-dense
    # relayout would cost more than the ~2 KB of stores it saves at these toy sizes.
    out_ref[...] = x3.astype(out_ref.dtype)


# ------------------------------ wrapper ------------------------------------------
def decoder_layer(x, enc, params):
    """x: (B, S, D), enc: (B, SE, D); params: f32 dict, weights stored as (in, out) == torch W.T."""
    cdt = jnp.bfloat16

    # bf16 weight slab A: 96 lanes wide — [wqkv1; wqkv2; w1 lane-padded to W96].
    wqkv1 = jnp.concatenate([params["wq1"], params["wk1"], params["wv1"]], axis=1)   # (D, 3D)
    wqkv2 = jnp.concatenate([params["wq2"], params["wk2"], params["wv2"]], axis=1)   # (D, 3D)
    w1e = jnp.pad(params["w1"], ((0, 0), (0, W96 - F)))                              # (D, W96)
    w96 = jnp.concatenate([wqkv1, wqkv2, w1e], axis=0).astype(cdt)                   # (3D, W96)

    # bf16 weight slab B: D lanes wide — [wo1; wo2; w2 row-padded to W96 rows].
    w2e = jnp.pad(params["w2"], ((0, W96 - F), (0, 0)))                              # (W96, D)
    w32 = jnp.concatenate([params["wo1"], params["wo2"], w2e], axis=0).astype(cdt)   # (2D+W96, D)

    # f32 bias / LayerNorm slab: one lane-padded row per vector parameter.
    def row(*vs):
        v = jnp.concatenate(vs) if len(vs) > 1 else vs[0]
        return jnp.pad(v, (0, W96 - v.shape[0]))[None, :]

    pslab = jnp.concatenate([
        row(params["bq1"], params["bk1"], params["bv1"]),
        row(params["bq2"], params["bk2"], params["bv2"]),
        row(params["bo1"]), row(params["bo2"]),
        row(params["b1"]), row(params["b2"]),
        row(params["g1"]), row(params["g2"]), row(params["g3"]),
        row(params["be1"]), row(params["be2"]), row(params["be3"]),
    ], axis=0).astype(jnp.float32)                                                   # (12, W96)

    tok = jnp.concatenate([x.reshape(NT, D), enc.reshape(NE, D)], axis=0)            # (NT+NE, D)

    vmem = pl.BlockSpec(memory_space=pltpu.MemorySpace.VMEM)
    out2d = pl.pallas_call(
        decoder_layer_kernel,
        out_shape=jax.ShapeDtypeStruct((NT, D), jnp.float32),
        in_specs=[vmem] * 4,
        out_specs=vmem,
    )(tok, w96, w32, pslab)
    return out2d.reshape(B, S, D)


# ----------------------- pure-JAX reference (for validation) ---------------------
def reference_decoder_layer(x, enc, p, compute_dtype=jnp.float32):
    """PyTorch-equivalent forward.  With compute_dtype=bfloat16 it mirrors the kernel's
    mixed precision (bf16 matmul operands, f32 accumulation / elementwise)."""
    cdt = compute_dtype

    def lin(a, w, b):
        return jnp.dot(a.astype(cdt), w.astype(cdt), preferred_element_type=jnp.float32) + b

    def mha(q_in, kv_in, wq, bq, wk, bk, wv, bv, wo, bo):
        q = lin(q_in, wq, bq)
        k = lin(kv_in, wk, bk)
        v = lin(kv_in, wv, bv)
        Bq, Sq, _ = q.shape
        Sk = k.shape[1]
        qh = q.reshape(Bq, Sq, H, HD).transpose(0, 2, 1, 3).astype(cdt)
        kh = k.reshape(Bq, Sk, H, HD).transpose(0, 2, 1, 3).astype(cdt)
        vh = v.reshape(Bq, Sk, H, HD).transpose(0, 2, 1, 3).astype(cdt)
        scores = jnp.einsum("bhqd,bhkd->bhqk", qh, kh,
                            preferred_element_type=jnp.float32) / math.sqrt(HD)
        probs = jax.nn.softmax(scores, axis=-1)
        ctx = jnp.einsum("bhqk,bhkd->bhqd", probs.astype(cdt), vh,
                         preferred_element_type=jnp.float32)
        ctx = ctx.transpose(0, 2, 1, 3).reshape(Bq, Sq, D)
        return lin(ctx, wo, bo)

    def ln(z, g, b):
        mu = jnp.mean(z, axis=-1, keepdims=True)
        var = jnp.mean((z - mu) ** 2, axis=-1, keepdims=True)
        return (z - mu) * jax.lax.rsqrt(var + EPS) * g + b

    a = mha(x, x, p["wq1"], p["bq1"], p["wk1"], p["bk1"], p["wv1"], p["bv1"], p["wo1"], p["bo1"])
    x1 = ln(x + a, p["g1"], p["be1"])
    c = mha(x1, enc, p["wq2"], p["bq2"], p["wk2"], p["bk2"], p["wv2"], p["bv2"], p["wo2"], p["bo2"])
    x2 = ln(x1 + c, p["g2"], p["be2"])
    hdn = jax.nn.relu(lin(x2, p["w1"], p["b1"]))
    ffn = lin(hdn, p["w2"], p["b2"])
    return ln(x2 + ffn, p["g3"], p["be3"])


# ----------------------------------- main -----------------------------------------
if __name__ == "__main__":
    key = jax.random.PRNGKey(0)
    keys = jax.random.split(key, 32)
    ki = iter(keys)

    def mat(shape, scale_=0.1):
        return (scale_ * jax.random.normal(next(ki), shape)).astype(jnp.float32)

    params = {}
    # attention projections (weights stored as (in, out) == torch weight.T)
    for name in ["q1", "k1", "v1", "o1", "q2", "k2", "v2", "o2"]:
        params["w" + name] = mat((D, D))
        params["b" + name] = mat((D,))
    # feed-forward
    params["w1"] = mat((D, F))
    params["b1"] = mat((F,))
    params["w2"] = mat((F, D))
    params["b2"] = mat((D,))
    # layernorms (PyTorch init: weight=1, bias=0)
    for i in (1, 2, 3):
        params[f"g{i}"] = jnp.ones((D,), jnp.float32)
        params[f"be{i}"] = jnp.zeros((D,), jnp.float32)

    x = jax.random.normal(next(ki), (B, S, D), dtype=jnp.float32)
    enc = jax.random.normal(next(ki), (B, SE, D), dtype=jnp.float32)

    out = jax.block_until_ready(decoder_layer(x, enc, params))
    assert out.shape == (B, S, D)

    # Tight check vs. a reference mirroring the kernel's bf16-operand / f32-accumulate math.
    ref_mixed = reference_decoder_layer(x, enc, params, compute_dtype=jnp.bfloat16)
    assert jnp.allclose(out, ref_mixed, rtol=5e-3, atol=5e-3), (
        f"mixed-precision mismatch: max abs diff {jnp.max(jnp.abs(out - ref_mixed))}"
    )

    # Looser sanity check vs. the pure-f32 PyTorch-equivalent forward.
    ref_f32 = reference_decoder_layer(x, enc, params, compute_dtype=jnp.float32)
    assert jnp.allclose(out, ref_f32, rtol=5e-2, atol=5e-2), (
        f"f32 semantic mismatch: max abs diff {jnp.max(jnp.abs(out - ref_f32))}"
    )

    print("KERNEL_OK")
</pallas_src>

<mosaic_0001>
module attributes {stable_mosaic.version = 11 : i64} {
  func.func @decoder_layer_kernel(%arg0: memref<32x32xf32, #tpu.memory_space<vmem>>, %arg1: memref<96x96xbf16, #tpu.memory_space<vmem>>, %arg2: memref<160x32xbf16, #tpu.memory_space<vmem>>, %arg3: memref<12x96xf32, #tpu.memory_space<vmem>>, %arg4: memref<16x32xf32, #tpu.memory_space<vmem>>) attributes {dimension_semantics = [], scalar_prefetch = 0 : i64, scratch_operands = 0 : i64, tpu.core_type = #tpu.core_type<tc>} {
    %c0 = arith.constant 0 : index
    %c0_0 = arith.constant 0 : index
    %0 = vector.load %arg0[%c0, %c0_0] : memref<32x32xf32, #tpu.memory_space<vmem>>, vector<32x32xf32>
    %1 = vector.extract_strided_slice %0 {offsets = [0, 0], sizes = [16, 32], strides = [1, 1]} : vector<32x32xf32> to vector<16x32xf32>
    %2 = vector.extract_strided_slice %0 {offsets = [16, 0], sizes = [16, 32], strides = [1, 1]} : vector<32x32xf32> to vector<16x32xf32>
    %c0_1 = arith.constant 0 : index
    %c0_2 = arith.constant 0 : index
    %3 = vector.load %arg1[%c0_1, %c0_2] : memref<96x96xbf16, #tpu.memory_space<vmem>>, vector<96x96xbf16>
    %c0_3 = arith.constant 0 : index
    %c0_4 = arith.constant 0 : index
    %4 = vector.load %arg2[%c0_3, %c0_4] : memref<160x32xbf16, #tpu.memory_space<vmem>>, vector<160x32xbf16>
    %c0_5 = arith.constant 0 : index
    %c0_6 = arith.constant 0 : index
    %5 = vector.load %arg3[%c0_5, %c0_6] : memref<12x96xf32, #tpu.memory_space<vmem>>, vector<12x96xf32>
    %6 = arith.truncf %1 : vector<16x32xf32> to vector<16x32xbf16>
    %7 = vector.extract_strided_slice %3 {offsets = [0, 0], sizes = [32, 96], strides = [1, 1]} : vector<96x96xbf16> to vector<32x96xbf16>
    %cst = arith.constant dense<0.000000e+00> : vector<16x96xf32>
    %8 = tpu.matmul %6, %7, %cst {dimension_numbers = #tpu.dot_dimension_numbers<[1], [0], [0], [1], [0, 0, 1, 1], [], []>} : vector<16x32xbf16>, vector<32x96xbf16>, vector<16x96xf32> -> vector<16x96xf32>
    %9 = vector.extract_strided_slice %5 {offsets = [0, 0], sizes = [1, 96], strides = [1, 1]} : vector<12x96xf32> to vector<1x96xf32>
    %10 = vector.broadcast %9 : vector<1x96xf32> to vector<16x96xf32>
    %11 = arith.addf %8, %10 : vector<16x96xf32>
    %12 = vector.extract_strided_slice %11 {offsets = [0, 0], sizes = [16, 32], strides = [1, 1]} : vector<16x96xf32> to vector<16x32xf32>
    %13 = vector.extract_strided_slice %11 {offsets = [0, 32], sizes = [16, 32], strides = [1, 1]} : vector<16x96xf32> to vector<16x32xf32>
    %14 = vector.extract_strided_slice %11 {offsets = [0, 64], sizes = [16, 32], strides = [1, 1]} : vector<16x96xf32> to vector<16x32xf32>
    %15 = vector.extract_strided_slice %4 {offsets = [0, 0], sizes = [32, 32], strides = [1, 1]} : vector<160x32xbf16> to vector<32x32xbf16>
    %16 = vector.shape_cast %12 : vector<16x32xf32> to vector<2x8x4x8xf32>
    %17 = tpu.transpose %16, [0, 2, 1, 3] : vector<2x8x4x8xf32> -> vector<2x4x8x8xf32>
    %18 = vector.shape_cast %17 : vector<2x4x8x8xf32> to vector<8x8x8xf32>
    %19 = arith.truncf %18 : vector<8x8x8xf32> to vector<8x8x8xbf16>
    %20 = vector.shape_cast %13 : vector<16x32xf32> to vector<2x8x4x8xf32>
    %21 = tpu.transpose %20, [0, 2, 1, 3] : vector<2x8x4x8xf32> -> vector<2x4x8x8xf32>
    %22 = vector.shape_cast %21 : vector<2x4x8x8xf32> to vector<8x8x8xf32>
    %23 = arith.truncf %22 : vector<8x8x8xf32> to vector<8x8x8xbf16>
    %24 = vector.shape_cast %14 : vector<16x32xf32> to vector<2x8x4x8xf32>
    %25 = tpu.transpose %24, [0, 2, 1, 3] : vector<2x8x4x8xf32> -> vector<2x4x8x8xf32>
    %26 = vector.shape_cast %25 : vector<2x4x8x8xf32> to vector<8x8x8xf32>
    %27 = arith.truncf %26 : vector<8x8x8xf32> to vector<8x8x8xbf16>
    "tpu.trace_start"() <{level = 10 : i32, message = "gqd,gkd->gqk"}> : () -> ()
    %cst_7 = arith.constant dense<0.000000e+00> : vector<8x8x8xf32>
    %28 = tpu.matmul %19, %23, %cst_7 {dimension_numbers = #tpu.dot_dimension_numbers<[2], [2], [1], [1], [0, 0, 0, 1, 1, 1], [0], [0]>} : vector<8x8x8xbf16>, vector<8x8x8xbf16>, vector<8x8x8xf32> -> vector<8x8x8xf32>
    "tpu.trace_stop"() : () -> ()
    %cst_8 = arith.constant 0.353553385 : f32
    %29 = vector.broadcast %cst_8 : f32 to vector<8x8x8xf32>
    %30 = arith.mulf %28, %29 : vector<8x8x8xf32>
    %cst_9 = arith.constant dense<0xFF800000> : vector<8x8xf32>
    %31 = vector.multi_reduction <maximumf>, %30, %cst_9 [2] : vector<8x8x8xf32> to vector<8x8xf32>
    %32 = vector.shape_cast %31 : vector<8x8xf32> to vector<8x8x1xf32>
    %33 = vector.broadcast %32 : vector<8x8x1xf32> to vector<8x8x8xf32>
    %34 = arith.subf %30, %33 : vector<8x8x8xf32>
    %35 = math.exp %34 : vector<8x8x8xf32>
    %cst_10 = arith.constant dense<0.000000e+00> : vector<8x8xf32>
    %36 = vector.multi_reduction <add>, %35, %cst_10 [2] : vector<8x8x8xf32> to vector<8x8xf32>
    %37 = vector.shape_cast %36 : vector<8x8xf32> to vector<8x8x1xf32>
    %38 = tpu.reciprocal %37 {approx = true} : vector<8x8x1xf32> -> vector<8x8x1xf32>
    %39 = vector.broadcast %38 : vector<8x8x1xf32> to vector<8x8x8xf32>
    %40 = arith.mulf %35, %39 : vector<8x8x8xf32>
    %41 = arith.truncf %40 : vector<8x8x8xf32> to vector<8x8x8xbf16>
    "tpu.trace_start"() <{level = 10 : i32, message = "gqk,gkd->gqd"}> : () -> ()
    %cst_11 = arith.constant dense<0.000000e+00> : vector<8x8x8xf32>
    %42 = tpu.matmul %41, %27, %cst_11 {dimension_numbers = #tpu.dot_dimension_numbers<[2], [1], [1], [2], [0, 0, 0, 1, 1, 2], [0], [0]>} : vector<8x8x8xbf16>, vector<8x8x8xbf16>, vector<8x8x8xf32> -> vector<8x8x8xf32>
    "tpu.trace_stop"() : () -> ()
    %43 = vector.shape_cast %42 : vector<8x8x8xf32> to vector<2x4x8x8xf32>
    %44 = tpu.transpose %43, [0, 2, 1, 3] : vector<2x4x8x8xf32> -> vector<2x8x4x8xf32>
    %45 = vector.shape_cast %44 : vector<2x8x4x8xf32> to vector<16x32xf32>
    %46 = arith.truncf %45 : vector<16x32xf32> to vector<16x32xbf16>
    %cst_12 = arith.constant dense<0.000000e+00> : vector<16x32xf32>
    %47 = tpu.matmul %46, %15, %cst_12 {dimension_numbers = #tpu.dot_dimension_numbers<[1], [0], [0], [1], [0, 0, 1, 1], [], []>} : vector<16x32xbf16>, vector<32x32xbf16>, vector<16x32xf32> -> vector<16x32xf32>
    %48 = vector.extract_strided_slice %5 {offsets = [2, 0], sizes = [1, 32], strides = [1, 1]} : vector<12x96xf32> to vector<1x32xf32>
    %49 = vector.broadcast %48 : vector<1x32xf32> to vector<16x32xf32>
    %50 = arith.addf %47, %49 : vector<16x32xf32>
    %51 = arith.addf %1, %50 : vector<16x32xf32>
    %cst_13 = arith.constant dense<0.000000e+00> : vector<16xf32>
    %52 = vector.multi_reduction <add>, %51, %cst_13 [1] : vector<16x32xf32> to vector<16xf32>
    %53 = vector.shape_cast %52 : vector<16xf32> to vector<16x1xf32>
    %cst_14 = arith.constant 3.200000e+01 : f32
    %54 = vector.broadcast %cst_14 : f32 to vector<16x1xf32>
    %55 = arith.divf %53, %54 : vector<16x1xf32>
    %56 = vector.broadcast %55 : vector<16x1xf32> to vector<16x32xf32>
    %57 = arith.subf %51, %56 : vector<16x32xf32>
    %58 = arith.mulf %57, %57 : vector<16x32xf32>
    %cst_15 = arith.constant dense<0.000000e+00> : vector<16xf32>
    %59 = vector.multi_reduction <add>, %58, %cst_15 [1] : vector<16x32xf32> to vector<16xf32>
    %60 = vector.shape_cast %59 : vector<16xf32> to vector<16x1xf32>
    %cst_16 = arith.constant 3.200000e+01 : f32
    %61 = vector.broadcast %cst_16 : f32 to vector<16x1xf32>
    %62 = arith.divf %60, %61 : vector<16x1xf32>
    %63 = vector.broadcast %55 : vector<16x1xf32> to vector<16x32xf32>
    %64 = arith.subf %51, %63 : vector<16x32xf32>
    %cst_17 = arith.constant 9.99999974E-6 : f32
    %65 = vector.broadcast %cst_17 : f32 to vector<16x1xf32>
    %66 = arith.addf %62, %65 : vector<16x1xf32>
    %67 = math.rsqrt %66 : vector<16x1xf32>
    %68 = vector.broadcast %67 : vector<16x1xf32> to vector<16x32xf32>
    %69 = arith.mulf %64, %68 : vector<16x32xf32>
    %70 = vector.extract_strided_slice %5 {offsets = [6, 0], sizes = [1, 32], strides = [1, 1]} : vector<12x96xf32> to vector<1x32xf32>
    %71 = vector.broadcast %70 : vector<1x32xf32> to vector<16x32xf32>
    %72 = arith.mulf %69, %71 : vector<16x32xf32>
    %73 = vector.extract_strided_slice %5 {offsets = [9, 0], sizes = [1, 32], strides = [1, 1]} : vector<12x96xf32> to vector<1x32xf32>
    %74 = vector.broadcast %73 : vector<1x32xf32> to vector<16x32xf32>
    %75 = arith.addf %72, %74 : vector<16x32xf32>
    %76 = tpu.concatenate %75, %2 in 0 : vector<16x32xf32>, vector<16x32xf32> -> vector<32x32xf32>
    %77 = arith.truncf %76 : vector<32x32xf32> to vector<32x32xbf16>
    %78 = vector.extract_strided_slice %3 {offsets = [32, 0], sizes = [32, 96], strides = [1, 1]} : vector<96x96xbf16> to vector<32x96xbf16>
    %cst_18 = arith.constant dense<0.000000e+00> : vector<32x96xf32>
    %79 = tpu.matmul %77, %78, %cst_18 {dimension_numbers = #tpu.dot_dimension_numbers<[1], [0], [0], [1], [0, 0, 1, 1], [], []>} : vector<32x32xbf16>, vector<32x96xbf16>, vector<32x96xf32> -> vector<32x96xf32>
    %80 = vector.extract_strided_slice %5 {offsets = [1, 0], sizes = [1, 96], strides = [1, 1]} : vector<12x96xf32> to vector<1x96xf32>
    %81 = vector.broadcast %80 : vector<1x96xf32> to vector<32x96xf32>
    %82 = arith.addf %79, %81 : vector<32x96xf32>
    %83 = vector.extract_strided_slice %82 {offsets = [0, 0], sizes = [16, 32], strides = [1, 1]} : vector<32x96xf32> to vector<16x32xf32>
    %84 = vector.extract_strided_slice %82 {offsets = [16, 32], sizes = [16, 32], strides = [1, 1]} : vector<32x96xf32> to vector<16x32xf32>
    %85 = vector.extract_strided_slice %82 {offsets = [16, 64], sizes = [16, 32], strides = [1, 1]} : vector<32x96xf32> to vector<16x32xf32>
    %86 = vector.extract_strided_slice %4 {offsets = [32, 0], sizes = [32, 32], strides = [1, 1]} : vector<160x32xbf16> to vector<32x32xbf16>
    %87 = vector.shape_cast %83 : vector<16x32xf32> to vector<2x8x4x8xf32>
    %88 = tpu.transpose %87, [0, 2, 1, 3] : vector<2x8x4x8xf32> -> vector<2x4x8x8xf32>
    %89 = vector.shape_cast %88 : vector<2x4x8x8xf32> to vector<8x8x8xf32>
    %90 = arith.truncf %89 : vector<8x8x8xf32> to vector<8x8x8xbf16>
    %91 = vector.shape_cast %84 : vector<16x32xf32> to vector<2x8x4x8xf32>
    %92 = tpu.transpose %91, [0, 2, 1, 3] : vector<2x8x4x8xf32> -> vector<2x4x8x8xf32>
    %93 = vector.shape_cast %92 : vector<2x4x8x8xf32> to vector<8x8x8xf32>
    %94 = arith.truncf %93 : vector<8x8x8xf32> to vector<8x8x8xbf16>
    %95 = vector.shape_cast %85 : vector<16x32xf32> to vector<2x8x4x8xf32>
    %96 = tpu.transpose %95, [0, 2, 1, 3] : vector<2x8x4x8xf32> -> vector<2x4x8x8xf32>
    %97 = vector.shape_cast %96 : vector<2x4x8x8xf32> to vector<8x8x8xf32>
    %98 = arith.truncf %97 : vector<8x8x8xf32> to vector<8x8x8xbf16>
    "tpu.trace_start"() <{level = 10 : i32, message = "gqd,gkd->gqk"}> : () -> ()
    %cst_19 = arith.constant dense<0.000000e+00> : vector<8x8x8xf32>
    %99 = tpu.matmul %90, %94, %cst_19 {dimension_numbers = #tpu.dot_dimension_numbers<[2], [2], [1], [1], [0, 0, 0, 1, 1, 1], [0], [0]>} : vector<8x8x8xbf16>, vector<8x8x8xbf16>, vector<8x8x8xf32> -> vector<8x8x8xf32>
    "tpu.trace_stop"() : () -> ()
    %cst_20 = arith.constant 0.353553385 : f32
    %100 = vector.broadcast %cst_20 : f32 to vector<8x8x8xf32>
    %101 = arith.mulf %99, %100 : vector<8x8x8xf32>
    %cst_21 = arith.constant dense<0xFF800000> : vector<8x8xf32>
    %102 = vector.multi_reduction <maximumf>, %101, %cst_21 [2] : vector<8x8x8xf32> to vector<8x8xf32>
    %103 = vector.shape_cast %102 : vector<8x8xf32> to vector<8x8x1xf32>
    %104 = vector.broadcast %103 : vector<8x8x1xf32> to vector<8x8x8xf32>
    %105 = arith.subf %101, %104 : vector<8x8x8xf32>
    %106 = math.exp %105 : vector<8x8x8xf32>
    %cst_22 = arith.constant dense<0.000000e+00> : vector<8x8xf32>
    %107 = vector.multi_reduction <add>, %106, %cst_22 [2] : vector<8x8x8xf32> to vector<8x8xf32>
    %108 = vector.shape_cast %107 : vector<8x8xf32> to vector<8x8x1xf32>
    %109 = tpu.reciprocal %108 {approx = true} : vector<8x8x1xf32> -> vector<8x8x1xf32>
    %110 = vector.broadcast %109 : vector<8x8x1xf32> to vector<8x8x8xf32>
    %111 = arith.mulf %106, %110 : vector<8x8x8xf32>
    %112 = arith.truncf %111 : vector<8x8x8xf32> to vector<8x8x8xbf16>
    "tpu.trace_start"() <{level = 10 : i32, message = "gqk,gkd->gqd"}> : () -> ()
    %cst_23 = arith.constant dense<0.000000e+00> : vector<8x8x8xf32>
    %113 = tpu.matmul %112, %98, %cst_23 {dimension_numbers = #tpu.dot_dimension_numbers<[2], [1], [1], [2], [0, 0, 0, 1, 1, 2], [0], [0]>} : vector<8x8x8xbf16>, vector<8x8x8xbf16>, vector<8x8x8xf32> -> vector<8x8x8xf32>
    "tpu.trace_stop"() : () -> ()
    %114 = vector.shape_cast %113 : vector<8x8x8xf32> to vector<2x4x8x8xf32>
    %115 = tpu.transpose %114, [0, 2, 1, 3] : vector<2x4x8x8xf32> -> vector<2x8x4x8xf32>
    %116 = vector.shape_cast %115 : vector<2x8x4x8xf32> to vector<16x32xf32>
    %117 = arith.truncf %116 : vector<16x32xf32> to vector<16x32xbf16>
    %cst_24 = arith.constant dense<0.000000e+00> : vector<16x32xf32>
    %118 = tpu.matmul %117, %86, %cst_24 {dimension_numbers = #tpu.dot_dimension_numbers<[1], [0], [0], [1], [0, 0, 1, 1], [], []>} : vector<16x32xbf16>, vector<32x32xbf16>, vector<16x32xf32> -> vector<16x32xf32>
    %119 = vector.extract_strided_slice %5 {offsets = [3, 0], sizes = [1, 32], strides = [1, 1]} : vector<12x96xf32> to vector<1x32xf32>
    %120 = vector.broadcast %119 : vector<1x32xf32> to vector<16x32xf32>
    %121 = arith.addf %118, %120 : vector<16x32xf32>
    %122 = arith.addf %75, %121 : vector<16x32xf32>
    %cst_25 = arith.constant dense<0.000000e+00> : vector<16xf32>
    %123 = vector.multi_reduction <add>, %122, %cst_25 [1] : vector<16x32xf32> to vector<16xf32>
    %124 = vector.shape_cast %123 : vector<16xf32> to vector<16x1xf32>
    %cst_26 = arith.constant 3.200000e+01 : f32
    %125 = vector.broadcast %cst_26 : f32 to vector<16x1xf32>
    %126 = arith.divf %124, %125 : vector<16x1xf32>
    %127 = vector.broadcast %126 : vector<16x1xf32> to vector<16x32xf32>
    %128 = arith.subf %122, %127 : vector<16x32xf32>
    %129 = arith.mulf %128, %128 : vector<16x32xf32>
    %cst_27 = arith.constant dense<0.000000e+00> : vector<16xf32>
    %130 = vector.multi_reduction <add>, %129, %cst_27 [1] : vector<16x32xf32> to vector<16xf32>
    %131 = vector.shape_cast %130 : vector<16xf32> to vector<16x1xf32>
    %cst_28 = arith.constant 3.200000e+01 : f32
    %132 = vector.broadcast %cst_28 : f32 to vector<16x1xf32>
    %133 = arith.divf %131, %132 : vector<16x1xf32>
    %134 = vector.broadcast %126 : vector<16x1xf32> to vector<16x32xf32>
    %135 = arith.subf %122, %134 : vector<16x32xf32>
    %cst_29 = arith.constant 9.99999974E-6 : f32
    %136 = vector.broadcast %cst_29 : f32 to vector<16x1xf32>
    %137 = arith.addf %133, %136 : vector<16x1xf32>
    %138 = math.rsqrt %137 : vector<16x1xf32>
    %139 = vector.broadcast %138 : vector<16x1xf32> to vector<16x32xf32>
    %140 = arith.mulf %135, %139 : vector<16x32xf32>
    %141 = vector.extract_strided_slice %5 {offsets = [7, 0], sizes = [1, 32], strides = [1, 1]} : vector<12x96xf32> to vector<1x32xf32>
    %142 = vector.broadcast %141 : vector<1x32xf32> to vector<16x32xf32>
    %143 = arith.mulf %140, %142 : vector<16x32xf32>
    %144 = vector.extract_strided_slice %5 {offsets = [10, 0], sizes = [1, 32], strides = [1, 1]} : vector<12x96xf32> to vector<1x32xf32>
    %145 = vector.broadcast %144 : vector<1x32xf32> to vector<16x32xf32>
    %146 = arith.addf %143, %145 : vector<16x32xf32>
    %147 = arith.truncf %146 : vector<16x32xf32> to vector<16x32xbf16>
    %148 = vector.extract_strided_slice %3 {offsets = [64, 0], sizes = [32, 96], strides = [1, 1]} : vector<96x96xbf16> to vector<32x96xbf16>
    %cst_30 = arith.constant dense<0.000000e+00> : vector<16x96xf32>
    %149 = tpu.matmul %147, %148, %cst_30 {dimension_numbers = #tpu.dot_dimension_numbers<[1], [0], [0], [1], [0, 0, 1, 1], [], []>} : vector<16x32xbf16>, vector<32x96xbf16>, vector<16x96xf32> -> vector<16x96xf32>
    %150 = vector.extract_strided_slice %5 {offsets = [4, 0], sizes = [1, 96], strides = [1, 1]} : vector<12x96xf32> to vector<1x96xf32>
    %151 = vector.broadcast %150 : vector<1x96xf32> to vector<16x96xf32>
    %152 = arith.addf %149, %151 : vector<16x96xf32>
    %cst_31 = arith.constant 0.000000e+00 : f32
    %153 = vector.broadcast %cst_31 : f32 to vector<16x96xf32>
    %154 = arith.maximumf %152, %153 : vector<16x96xf32>
    %155 = arith.truncf %154 : vector<16x96xf32> to vector<16x96xbf16>
    %156 = vector.extract_strided_slice %4 {offsets = [64, 0], sizes = [96, 32], strides = [1, 1]} : vector<160x32xbf16> to vector<96x32xbf16>
    %cst_32 = arith.constant dense<0.000000e+00> : vector<16x32xf32>
    %157 = tpu.matmul %155, %156, %cst_32 {dimension_numbers = #tpu.dot_dimension_numbers<[1], [0], [0], [1], [0, 0, 1, 1], [], []>} : vector<16x96xbf16>, vector<96x32xbf16>, vector<16x32xf32> -> vector<16x32xf32>
    %158 = vector.extract_strided_slice %5 {offsets = [5, 0], sizes = [1, 32], strides = [1, 1]} : vector<12x96xf32> to vector<1x32xf32>
    %159 = vector.broadcast %158 : vector<1x32xf32> to vector<16x32xf32>
    %160 = arith.addf %157, %159 : vector<16x32xf32>
    %161 = arith.addf %146, %160 : vector<16x32xf32>
    %cst_33 = arith.constant dense<0.000000e+00> : vector<16xf32>
    %162 = vector.multi_reduction <add>, %161, %cst_33 [1] : vector<16x32xf32> to vector<16xf32>
    %163 = vector.shape_cast %162 : vector<16xf32> to vector<16x1xf32>
    %cst_34 = arith.constant 3.200000e+01 : f32
    %164 = vector.broadcast %cst_34 : f32 to vector<16x1xf32>
    %165 = arith.divf %163, %164 : vector<16x1xf32>
    %166 = vector.broadcast %165 : vector<16x1xf32> to vector<16x32xf32>
    %167 = arith.subf %161, %166 : vector<16x32xf32>
    %168 = arith.mulf %167, %167 : vector<16x32xf32>
    %cst_35 = arith.constant dense<0.000000e+00> : vector<16xf32>
    %169 = vector.multi_reduction <add>, %168, %cst_35 [1] : vector<16x32xf32> to vector<16xf32>
    %170 = vector.shape_cast %169 : vector<16xf32> to vector<16x1xf32>
    %cst_36 = arith.constant 3.200000e+01 : f32
    %171 = vector.broadcast %cst_36 : f32 to vector<16x1xf32>
    %172 = arith.divf %170, %171 : vector<16x1xf32>
    %173 = vector.broadcast %165 : vector<16x1xf32> to vector<16x32xf32>
    %174 = arith.subf %161, %173 : vector<16x32xf32>
    %cst_37 = arith.constant 9.99999974E-6 : f32
    %175 = vector.broadcast %cst_37 : f32 to vector<16x1xf32>
    %176 = arith.addf %172, %175 : vector<16x1xf32>
    %177 = math.rsqrt %176 : vector<16x1xf32>
    %178 = vector.broadcast %177 : vector<16x1xf32> to vector<16x32xf32>
    %179 = arith.mulf %174, %178 : vector<16x32xf32>
    %180 = vector.extract_strided_slice %5 {offsets = [8, 0], sizes = [1, 32], strides = [1, 1]} : vector<12x96xf32> to vector<1x32xf32>
    %181 = vector.broadcast %180 : vector<1x32xf32> to vector<16x32xf32>
    %182 = arith.mulf %179, %181 : vector<16x32xf32>
    %183 = vector.extract_strided_slice %5 {offsets = [11, 0], sizes = [1, 32], strides = [1, 1]} : vector<12x96xf32> to vector<1x32xf32>
    %184 = vector.broadcast %183 : vector<1x32xf32> to vector<16x32xf32>
    %185 = arith.addf %182, %184 : vector<16x32xf32>
    %c0_38 = arith.constant 0 : index
    %c0_39 = arith.constant 0 : index
    %186 = vector.load %arg4[%c0_38, %c0_39] : memref<16x32xf32, #tpu.memory_space<vmem>>, vector<16x32xf32>
    tpu.vector_store %arg4[%c0_38, %c0_39], %185 {strides = array<i32>} : memref<16x32xf32, #tpu.memory_space<vmem>>, vector<16x32xf32>,
    return
  }
}

</mosaic_0001>

<bundles_post_ra>
// kernel: tpu_custom_call.1
= control target key start
LH: loop header
LB: loop body
LE: loop exit
PB: predicated region body
PF: predicated region fallthrough
CT: control target
= control target key end

     0   :  { %v5305_v1 = vmov 0.0   ;;  %vm5306_vm0 = vmmov 0   ;;  %vm74_vm1 = vcmask 261120   ;;  %s6353_s0 = inlined_call_operand.vmem [shape: f32[32,32], index: 0, kind: input, shape index: {}]   ;;  %s6354_s1 = inlined_call_operand.vmem [shape: bf16[96,96], index: 1, kind: input, shape index: {}]   ;;  %s6355_s2 = inlined_call_operand.vmem [shape: bf16[160,32], index: 2, kind: input, shape index: {}]   ;;  %s6356_s3 = inlined_call_operand.vmem [shape: f32[12,96], index: 3, kind: input, shape index: {}]   ;;  %s6357_s4 = inlined_call_operand.hbm [shape: f32[16,32], index: 4, kind: output, shape index: {}]  }
   0x1   :  { %v5186_v0 = vld [vmem:[%s6354_s1 + $0x8] sm:$0xff]   ;;  %4894 = vmatprep.subr.bf16.mxu0 %v5305_v1  ;;  %4914 = vmatprep.subr.bf16.mxu1 %v5305_v1  ;;  %v5187_v2 = vld [vmem:[%s6354_s1] sm:$0xff]  }
   0x2   :  { %4895 = vmatpush3.bf16.msra.mxu0 %v5186_v0  ;;  %4898 = vmatprep.mubr.msk.bf16.mxu0 %vm5306_vm0, %v5305_v1  ;;  %v19_v3 = vld [vmem:[%s6353_s0] sm:$0xff]  ;;  %v20_v4 = vld [vmem:[%s6353_s0 + $0x8] sm:$0xff] }
   0x3   :  { %4896 = vmatprep.subr.bf16.mxu0 %v5305_v1  ;;  %4916 = vmatprep.mubr.msk.bf16.mxu1 %vm5306_vm0, %v5305_v1  ;;  %v57_v5 = vpack.c.bf16 %v20_v4, %v19_v3 }
   0x6   :  { %4897 = vmatpush3.bf16.msra.mxu0 %v5187_v2 }
   0x7   :  { %4902 = vmatprep.subr.bf16.mxu0 %v5305_v1 }
   0x9   :  { %4899 = vmatmul.mubr.msk.bf16.vlgmr.msra.gmra.mxu0 %vm74_vm1, %v57_v5 }
   0xa   :  { %4904 = vmatprep.mubr.msk.bf16.mxu0 %vm5306_vm0, %v5305_v1 }
   0xb   :  { %9 = vsyncpa [#allocation3], 0  ;;  %v58_v6 = vlaneseq  ;;  %v55_v9 = vld [vmem:[%s6356_s3] sm:$0xff]  ;;  %s5307_s25 = smov 104   ;;  %s5308_s26 = smov 120   ;;  %vm1027_vm2 = vcmask 64512  }
   0xc   :  { %s5309_s27 = smov 112   ;;  %s5310_s28 = smov 96   ;;  %v5312_v23 = vmov 1983009808   ;;  %v5313_v26 = vmov 1934713408  }
   0xd   :  { %v5367_v7 = vshrl.u32 %v58_v6, 7  ;;  %s5311_s29 = smov 64   ;;  %v142_v24 = vunpack.c.l.s4 %v5312_v23  ;;  %v174_v27 = vunpack.c.l.s4 %v5313_v26  ;;  %vm1503_vm3 = vcmask 1043456   ;;  %s5314_s8 = smov 16  }
   0xe   :  { %s5315_s9 = smov 8   ;;  %s5316_s10 = smov 24   ;;  %vm2167_vm4 = vcmask 130048   ;;  %vm2170_vm5 = vcmask 195584   ;;  %vm4617_vm6 = vcmask 785408  }
   0xf   :  { %v60_v8 = vsub.s32 0, %v5367_v7  ;;  %v143_v25 = vunpack.c.0.s8 %v142_v24  ;;  %v175_v32 = vunpack.c.0.s8 %v174_v27 }
  0x11   :  { %v61_v10 = vrot.slane %v55_v9, %v60_v8  ;;  %v5416_v29 = vsub.s32 %v143_v25, %v5367_v7  ;;  %v5427_v37 = vsub.s32 %v175_v32, %v5367_v7 }
  0xc9   :  { %v112_v11 = vpop.f32.mrf.mxu0 }
  0xca   :  { %v113_v12 = vadd.f32 %v112_v11, %v61_v10 }
  0xcb   :  { %v4900_v13 = vpop.f32.mrf.mxu0 }
  0xcc   :  { %133 = vrot.lane.b32.xlu1 %v113_v12, %s5307_s25  ;;  %121 = vrot.lane.b32.xlu0 %v113_v12, %s5308_s26 }
  0xcd   :  { %v115_v14 = vpop.f32.mrf.mxu0 }
  0xce   :  { %v5377_v15 = vadd.f32 %v115_v14, %v61_v10 }
  0xcf   :  { %v4901_v16 = vpop.f32.mrf.mxu0 }
  0xd0   :  { %127 = vrot.lane.b32.xlu0 %v113_v12, %s5309_s27  ;;  %123 = vrot.lane.b32.xlu1 %v5377_v15, %s5308_s26 }
  0xd4   :  { %129 = vrot.lane.b32.xlu0 %v5377_v15, %s5309_s27  ;;  %135 = vrot.lane.b32.xlu1 %v5377_v15, %s5307_s25 }
  0xd8   :  { %419 = vrot.lane.b32.xlu0 %v113_v12, %s5310_s28 }
 0x13e   :  { %v5387_v17 = vpop.permute.xlu0 %121  ;;  %v5389_v18 = vpop.permute.xlu1 %133 }
 0x13f   :  { %423 = vrot.lane.b32.xlu1 %v5387_v17, %s5310_s28  ;;  %v155_v30 = vcombine.low %v5387_v17, %v5389_v18  ;;  %v156_v33 = vcombine.high %v5387_v17, %v5389_v18 }
 0x141   :  { %v163_v35 = vrot.slane %v155_v30, %v5416_v29  ;;  %v170_v38 = vrot.slane %v156_v33, %v5416_v29 }
 0x142   :  { %v5393_v19 = vpop.permute.xlu0 %127  ;;  %v5399_v20 = vpop.permute.xlu1 %123 }
 0x143   :  { %427 = vrot.lane.b32.xlu0 %v5393_v19, %s5310_s28  ;;  %431 = vrot.lane.b32.xlu1 %v5389_v18, %s5310_s28  ;;  %v139_v28 = vcombine.low %v113_v12, %v5393_v19  ;;  %v140_v31 = vcombine.high %v113_v12, %v5393_v19 }
 0x145   :  { %v147_v34 = vrot.slane %v139_v28, %v5416_v29  ;;  %v154_v36 = vrot.slane %v140_v31, %v5416_v29 }
 0x146   :  { %v5405_v21 = vpop.permute.xlu0 %129  ;;  %v5407_v22 = vpop.permute.xlu1 %135 }
 0x147   :  { %421 = vrot.lane.b32.xlu0 %v5377_v15, %s5310_s28  ;;  %425 = vrot.lane.b32.xlu1 %v5399_v20, %s5310_s28  ;;  %v171_v39 = vcombine.low %v147_v34, %v163_v35  ;;  %v172_v40 = vcombine.high %v147_v34, %v163_v35  ;;  %v187_v41 = vcombine.low %v154_v36, %v170_v38 }
 0x148   :  { %v188_v42 = vcombine.high %v154_v36, %v170_v38  ;;  %v207_v43 = vcombine.low %v5377_v15, %v5405_v21  ;;  %v223_v44 = vcombine.low %v5399_v20, %v5407_v22  ;;  %v208_v47 = vcombine.high %v5377_v15, %v5405_v21 }
 0x149   :  { %v179_v45 = vrot.slane %v171_v39, %v5427_v37  ;;  %v186_v46 = vrot.slane %v172_v40, %v5427_v37  ;;  %v224_v48 = vcombine.high %v5399_v20, %v5407_v22  ;;  %v195_v49 = vrot.slane %v187_v41, %v5427_v37 }
 0x14a   :  { %v202_v50 = vrot.slane %v188_v42, %v5427_v37  ;;  %v215_v51 = vrot.slane %v207_v43, %v5416_v29  ;;  %v231_v52 = vrot.slane %v223_v44, %v5416_v29  ;;  %v222_v55 = vrot.slane %v208_v47, %v5416_v29  ;;  %v420_v60 = vpop.permute.xlu0 %419 }
 0x14b   :  { %429 = vrot.lane.b32.xlu0 %v5405_v21, %s5310_s28  ;;  %433 = vrot.lane.b32.xlu1 %v5407_v22, %s5310_s28  ;;  %v275_v53 = vcombine.low %v179_v45, %v186_v46  ;;  %v4723_v54 = vcombine.high %v179_v45, %v186_v46  ;;  %v238_v56 = vrot.slane %v224_v48, %v5416_v29 }
 0x14c   :  { %v291_v57 = vcombine.low %v195_v49, %v202_v50  ;;  %v239_v58 = vcombine.low %v215_v51, %v231_v52  ;;  %v240_v59 = vcombine.high %v215_v51, %v231_v52  ;;  %v4724_v62 = vcombine.high %v195_v49, %v202_v50 }
 0x14d   :  { %v255_v63 = vcombine.low %v222_v55, %v238_v56  ;;  %v256_v0 = vcombine.high %v222_v55, %v238_v56  ;;  %v282_v2 = vrot.slane %v275_v53, %v5416_v29  ;;  %v290_v3 = vrot.slane %v4723_v54, %v5416_v29 }
 0x14e   :  { %v247_v4 = vrot.slane %v239_v58, %v5427_v37  ;;  %v254_v5 = vrot.slane %v240_v59, %v5427_v37  ;;  %v5451_v10 = vrot.slane %v291_v57, %v5416_v29  ;;  %v5460_v24 = vrot.slane %v4724_v62, %v5416_v29 }
 0x14f   :  { %723 = vrot.lane.b32.xlu1 %v113_v12, %s5311_s29  ;;  %v5454_v16 = vrot.slane %v255_v63, %v5427_v37  ;;  %v5457_v23 = vrot.slane %v256_v0, %v5427_v37  ;;  %v307_v25 = vcombine.low %v282_v2, %v290_v3  ;;  %v308_v34 = vcombine.high %v282_v2, %v290_v3 }
 0x150   :  { %v343_v31 = vcombine.low %v247_v4, %v254_v5  ;;  %v4725_v32 = vcombine.high %v247_v4, %v254_v5  ;;  %v323_v44 = vcombine.low %v5451_v10, %v5460_v24  ;;  %v324_v53 = vcombine.high %v5451_v10, %v5460_v24 }
 0x151   :  { %v359_v41 = vcombine.low %v5454_v16, %v5457_v23  ;;  %v4726_v42 = vcombine.high %v5454_v16, %v5457_v23  ;;  %v5471_v43 = vrot.slane %v307_v25, %v5427_v37  ;;  %v5486_v52 = vrot.slane %v308_v34, %v5427_v37 }
 0x152   :  { %v5480_v49 = vrot.slane %v343_v31, %v5416_v29  ;;  %v5483_v50 = vrot.slane %v4725_v32, %v5416_v29 }
 0x153   :  { %v5507_v34 = vrot.slane %v359_v41, %v5416_v29 }
 0x1b1   :  { %v424_v61 = vpop.permute.xlu1 %423 }
 0x1b5   :  { %v428_v6 = vpop.permute.xlu0 %427  ;;  %v432_v9 = vpop.permute.xlu1 %431 }
 0x1b6   :  { %v443_v11 = vcombine.low %v420_v60, %v428_v6  ;;  %v444_v12 = vcombine.high %v420_v60, %v428_v6  ;;  %v459_v13 = vcombine.low %v424_v61, %v432_v9  ;;  %v460_v14 = vcombine.high %v424_v61, %v432_v9 }
 0x1b8   :  { %v451_v26 = vrot.slane %v443_v11, %v5416_v29  ;;  %v458_v27 = vrot.slane %v444_v12, %v5416_v29  ;;  %v467_v28 = vrot.slane %v459_v13, %v5416_v29  ;;  %v474_v30 = vrot.slane %v460_v14, %v5416_v29 }
 0x1b9   :  { %v422_v33 = vpop.permute.xlu0 %421  ;;  %v426_v40 = vpop.permute.xlu1 %425 }
 0x1ba   :  { %v475_v35 = vcombine.low %v451_v26, %v467_v28  ;;  %v476_v36 = vcombine.high %v451_v26, %v467_v28  ;;  %v491_v38 = vcombine.low %v458_v27, %v474_v30  ;;  %v492_v39 = vcombine.high %v458_v27, %v474_v30 }
 0x1bc   :  { %v483_v45 = vrot.slane %v475_v35, %v5427_v37  ;;  %v490_v46 = vrot.slane %v476_v36, %v5427_v37  ;;  %v499_v47 = vrot.slane %v491_v38, %v5427_v37  ;;  %v506_v48 = vrot.slane %v492_v39, %v5427_v37 }
 0x1bd   :  { %v430_v51 = vpop.permute.xlu0 %429  ;;  %v434_v58 = vpop.permute.xlu1 %433  ;;  %v5510_v35 = vrot.slane %v4726_v42, %v5416_v29 }
 0x1be   :  { %v579_v54 = vcombine.low %v483_v45, %v490_v46  ;;  %v4727_v55 = vcombine.high %v483_v45, %v490_v46  ;;  %v595_v56 = vcombine.low %v499_v47, %v506_v48  ;;  %v4728_v57 = vcombine.high %v499_v47, %v506_v48 }
 0x1bf   :  { %v511_v59 = vcombine.low %v422_v33, %v430_v51  ;;  %v512_v60 = vcombine.high %v422_v33, %v430_v51  ;;  %v527_v61 = vcombine.low %v426_v40, %v434_v58  ;;  %v528_v62 = vcombine.high %v426_v40, %v434_v58 }
 0x1c0   :  { %v586_v63 = vrot.slane %v579_v54, %v5416_v29  ;;  %v594_v0 = vrot.slane %v4727_v55, %v5416_v29  ;;  %v602_v2 = vrot.slane %v595_v56, %v5416_v29  ;;  %v610_v3 = vrot.slane %v4728_v57, %v5416_v29 }
 0x1c1   :  { %v519_v4 = vrot.slane %v511_v59, %v5416_v29  ;;  %v526_v5 = vrot.slane %v512_v60, %v5416_v29  ;;  %v535_v6 = vrot.slane %v527_v61, %v5416_v29  ;;  %v542_v9 = vrot.slane %v528_v62, %v5416_v29 }
 0x1c2   :  { %v611_v10 = vcombine.low %v586_v63, %v594_v0  ;;  %v627_v11 = vcombine.low %v602_v2, %v610_v3  ;;  %v612_v12 = vcombine.high %v586_v63, %v594_v0  ;;  %v628_v13 = vcombine.high %v602_v2, %v610_v3 }
 0x1c3   :  { %v543_v14 = vcombine.low %v519_v4, %v535_v6  ;;  %v544_v16 = vcombine.high %v519_v4, %v535_v6  ;;  %v559_v23 = vcombine.low %v526_v5, %v542_v9  ;;  %v560_v24 = vcombine.high %v526_v5, %v542_v9 }
 0x1c4   :  { %v619_v25 = vrot.slane %v611_v10, %v5427_v37  ;;  %v635_v26 = vrot.slane %v627_v11, %v5427_v37  ;;  %v626_v27 = vrot.slane %v612_v12, %v5427_v37  ;;  %v642_v28 = vrot.slane %v628_v13, %v5427_v37 }
 0x1c5   :  { %v551_v30 = vrot.slane %v543_v14, %v5427_v37  ;;  %v558_v31 = vrot.slane %v544_v16, %v5427_v37  ;;  %v567_v32 = vrot.slane %v559_v23, %v5427_v37  ;;  %v574_v33 = vrot.slane %v560_v24, %v5427_v37 }
 0x1c6   :  { %v643_v36 = vcombine.low %v619_v25, %v635_v26  ;;  %v645_v38 = vcombine.low %v626_v27, %v642_v28  ;;  %v331_v51 = vrot.slane %v323_v44, %v5427_v37  ;;  %v338_v54 = vrot.slane %v324_v53, %v5427_v37 }
 0x1c7   :  { %v647_v39 = vcombine.low %v551_v30, %v558_v31  ;;  %v4729_v40 = vcombine.high %v551_v30, %v558_v31  ;;  %v663_v45 = vcombine.low %v567_v32, %v574_v33  ;;  %v4730_v46 = vcombine.high %v567_v32, %v574_v33 }
 0x1c8   :  { %v715_v47 = vpack.c.bf16 %v643_v36, %v643_v36  ;;  %v717_v48 = vpack.c.bf16 %v645_v38, %v645_v38  ;;  %v644_v59 = vcombine.high %v619_v25, %v635_v26  ;;  %v339_v53 = vcombine.low %v5471_v43, %v331_v51 }
 0x1c9   :  { %v654_v55 = vrot.slane %v647_v39, %v5416_v29  ;;  %v662_v41 = vrot.slane %v4729_v40, %v5416_v29  ;;  %v670_v56 = vrot.slane %v663_v45, %v5416_v29  ;;  %v678_v42 = vrot.slane %v4730_v46, %v5416_v29 }
 0x1ca   :  { %v1032_v57 = vsel %vm1027_vm2, %v715_v47, 0  ;;  %v1124_v58 = vsel %vm1027_vm2, %v717_v48, 0  ;;  %v341_v62 = vcombine.low %v5486_v52, %v338_v54  ;;  %v375_v3 = vcombine.low %v5480_v49, %v5483_v50 }
 0x1cb   :  { %4903 = vmatpush3.bf16.xpose.msra.mxu0 %v1032_v57  ;;  %4915 = vmatpush3.bf16.xpose.msra.mxu1 %v1124_v58  ;;  %v679_v60 = vcombine.low %v654_v55, %v662_v41  ;;  %v695_v61 = vcombine.low %v670_v56, %v678_v42  ;;  %v680_v44 = vcombine.high %v654_v55, %v662_v41 }
 0x1cc   :  { %4908 = vmatprep.subr.bf16.mxu0 %v5305_v1  ;;  %4926 = vmatprep.subr.bf16.mxu1 %v5305_v1  ;;  %v696_v63 = vcombine.high %v670_v56, %v678_v42  ;;  %v391_v4 = vcombine.low %v5507_v34, %v5510_v35  ;;  %v716_v5 = vpack.c.bf16 %v644_v59, %v644_v59 }
 0x1cd   :  { %v687_v0 = vrot.slane %v679_v60, %v5427_v37  ;;  %v703_v2 = vrot.slane %v695_v61, %v5427_v37  ;;  %v694_v9 = vrot.slane %v680_v44, %v5427_v37  ;;  %v411_v11 = vpack.c.bf16 %v339_v53, %v339_v53 }
 0x1ce   :  { %v710_v10 = vrot.slane %v696_v63, %v5427_v37  ;;  %v413_v12 = vpack.c.bf16 %v341_v62, %v341_v62  ;;  %v383_v14 = vrot.slane %v375_v3, %v5427_v37  ;;  %v399_v16 = vrot.slane %v391_v4, %v5427_v37 }
 0x1cf   :  { %v711_v6 = vcombine.low %v687_v0, %v703_v2  ;;  %v1078_v23 = vsel %vm1027_vm2, %v716_v5, 0  ;;  %v646_v24 = vcombine.high %v626_v27, %v642_v28  ;;  %v340_v30 = vcombine.high %v5471_v43, %v331_v51 }
 0x1d0   :  { %v713_v26 = vcombine.low %v694_v9, %v710_v10  ;;  %v407_v31 = vcombine.low %v383_v14, %v399_v16  ;;  %v376_v27 = vcombine.high %v5480_v49, %v5483_v50  ;;  %v392_v28 = vcombine.high %v5507_v34, %v5510_v35 }
 0x1d1   :  { %v719_v13 = vpack.c.bf16 %v711_v6, %v711_v6  ;;  %v718_v32 = vpack.c.bf16 %v646_v24, %v646_v24  ;;  %v412_v36 = vpack.c.bf16 %v340_v30, %v340_v30  ;;  %v712_v45 = vcombine.high %v687_v0, %v703_v2 }
 0x1d2   :  { %4905 = vmatmul.mubr.msk.bf16.vlgmr.msra.gmra.mxu0 %vm1027_vm2, %v411_v11  ;;  %4917 = vmatmul.mubr.msk.bf16.vlgmr.msra.gmra.mxu1 %vm1027_vm2, %v413_v12  ;;  %v721_v33 = vpack.c.bf16 %v713_v26, %v713_v26  ;;  %v415_v38 = vpack.c.bf16 %v407_v31, %v407_v31  ;;  %v390_v39 = vrot.slane %v376_v27, %v5427_v37 }
 0x1d3   :  { %4909 = vmatpush3.bf16.xpose.msra.mxu0 %v1078_v23  ;;  %v1216_v25 = vsel %vm1027_vm2, %v719_v13, 0  ;;  %4910 = vmatprep.mubr.msk.bf16.mxu0 %vm5306_vm0, %v5305_v1  ;;  %v406_v40 = vrot.slane %v392_v28, %v5427_v37  ;;  %v1170_v43 = vsel %vm1027_vm2, %v718_v32, 0  ;;  %v342_v50 = vcombine.high %v5486_v52, %v338_v54 }
 0x1d4   :  { %4927 = vmatpush3.bf16.xpose.msra.mxu1 %v1216_v25  ;;  %4928 = vmatprep.mubr.msk.bf16.mxu1 %vm5306_vm0, %v5305_v1  ;;  %v1308_v49 = vsel %vm1027_vm2, %v721_v33, 0  ;;  %v720_v35 = vpack.c.bf16 %v712_v45, %v712_v45  ;;  %v714_v52 = vcombine.high %v694_v9, %v710_v10  ;;  %v408_v51 = vcombine.high %v383_v14, %v399_v16 }
 0x1d5   :  { %4920 = vmatprep.subr.bf16.mxu0 %v5305_v1  ;;  %4938 = vmatprep.subr.bf16.mxu1 %v5305_v1  ;;  %v409_v34 = vcombine.low %v390_v39, %v406_v40  ;;  %v414_v46 = vpack.c.bf16 %v342_v50, %v342_v50  ;;  %v410_v56 = vcombine.high %v390_v39, %v406_v40 }
 0x1d6   :  { %v1262_v48 = vsel %vm1027_vm2, %v720_v35, 0  ;;  %v722_v54 = vpack.c.bf16 %v714_v52, %v714_v52  ;;  %v416_v55 = vpack.c.bf16 %v408_v51, %v408_v51 }
 0x1d7   :  { %v417_v47 = vpack.c.bf16 %v409_v34, %v409_v34  ;;  %v418_v42 = vpack.c.bf16 %v410_v56, %v410_v56 }
 0x1d8   :  { %v1354_v41 = vsel %vm1027_vm2, %v722_v54, 0 }
 0x1da   :  { %4911 = vmatmul.mubr.msk.bf16.vlgmr.msra.gmra.mxu0 %vm1027_vm2, %v412_v36 }
 0x1db   :  { %4929 = vmatmul.mubr.msk.bf16.vlgmr.msra.gmra.mxu1 %vm1027_vm2, %v415_v38  ;;  %4921 = vmatpush3.bf16.xpose.msra.mxu0 %v1170_v43 }
 0x1dc   :  { %4939 = vmatpush3.bf16.xpose.msra.mxu1 %v1308_v49  ;;  %4922 = vmatprep.mubr.msk.bf16.mxu0 %vm5306_vm0, %v5305_v1 }
 0x1dd   :  { %4940 = vmatprep.mubr.msk.bf16.mxu1 %vm5306_vm0, %v5305_v1  ;;  %4932 = vmatprep.subr.bf16.mxu0 %v5305_v1 }
 0x1de   :  { %4950 = vmatprep.subr.bf16.mxu1 %v5305_v1 }
 0x1e2   :  { %4923 = vmatmul.mubr.msk.bf16.vlgmr.msra.gmra.mxu0 %vm1027_vm2, %v414_v46 }
 0x1e3   :  { %4941 = vmatmul.mubr.msk.bf16.vlgmr.msra.gmra.mxu1 %vm1027_vm2, %v417_v47  ;;  %4933 = vmatpush3.bf16.xpose.msra.mxu0 %v1262_v48 }
 0x1e4   :  { %4934 = vmatprep.mubr.msk.bf16.mxu0 %vm5306_vm0, %v5305_v1  ;;  %4944 = vmatprep.subr.bf16.mxu0 %v5305_v1 }
 0x1e5   :  { %4952 = vmatprep.mubr.msk.bf16.mxu1 %vm5306_vm0, %v5305_v1 }
 0x1ea   :  { %4935 = vmatmul.mubr.msk.bf16.vlgmr.msra.gmra.mxu0 %vm1027_vm2, %v416_v55 }
 0x1eb   :  { %4945 = vmatpush3.bf16.xpose.msra.mxu0 %v1354_v41  ;;  %4946 = vmatprep.mubr.msk.bf16.mxu0 %vm5306_vm0, %v5305_v1 }
 0x1ec   :  { %4956 = vmatprep.subr.bf16.mxu0 %v5305_v1 }
 0x1f2   :  { %4947 = vmatmul.mubr.msk.bf16.vlgmr.msra.gmra.mxu0 %vm1027_vm2, %v418_v42  ;;  %v724_v42 = vpop.permute.xlu1 %723 }
 0x1f3   :  { %4958 = vmatprep.mubr.msk.bf16.mxu0 %vm5306_vm0, %v5305_v1 }
 0x292   :  { %v1068_v57 = vpop.f32.mrf.mxu0  ;;  %v1160_v58 = vpop.f32.mrf.mxu1 }
 0x293   :  { %v1396_v59 = vmul.f32 0.35355338, %v1068_v57  ;;  %v1398_v44 = vmul.f32 0.35355338, %v1160_v58 }
 0x294   :  { %v4906_v60 = vpop.f32.mrf.mxu0  ;;  %v4918_v61 = vpop.f32.mrf.mxu1 }
 0x295   :  { %v1404_v53 = vsel %vm1027_vm2, %v1396_v59, -inf  ;;  %v1410_v3 = vsel %vm1027_vm2, %v1398_v44, -inf }
 0x296   :  { %v1163_v62 = vpop.f32.mrf.mxu1  ;;  %1405 = vmax.xlane.f32.xlu0 %v1404_v53  ;;  %v1071_v63 = vpop.f32.mrf.mxu0 }
 0x298   :  { %v4907_v0 = vpop.f32.mrf.mxu0  ;;  %v4919_v2 = vpop.f32.mrf.mxu1 }
 0x29a   :  { %1411 = vmax.xlane.f32.xlu0 %v1410_v3  ;;  %v1114_v4 = vpop.f32.mrf.mxu0 }
 0x29b   :  { %v1252_v5 = vpop.f32.mrf.mxu1  ;;  %v1397_v6 = vmul.f32 0.35355338, %v1114_v4 }
 0x29c   :  { %v4912_v9 = vpop.f32.mrf.mxu0  ;;  %v1400_v10 = vmul.f32 0.35355338, %v1252_v5 }
 0x29d   :  { %v4930_v11 = vpop.f32.mrf.mxu1  ;;  %v1407_v12 = vsel %vm1027_vm2, %v1397_v6, -inf }
 0x29e   :  { %1408 = vmax.xlane.f32.xlu1 %v1407_v12  ;;  %v1117_v13 = vpop.f32.mrf.mxu0  ;;  %v1416_v24 = vsel %vm1027_vm2, %v1400_v10, -inf }
 0x29f   :  { %v1255_v14 = vpop.f32.mrf.mxu1 }
 0x2a0   :  { %v4913_v16 = vpop.f32.mrf.mxu0 }
 0x2a1   :  { %v4931_v23 = vpop.f32.mrf.mxu1 }
 0x2a2   :  { %1417 = vmax.xlane.f32.xlu1 %v1416_v24  ;;  %v1206_v25 = vpop.f32.mrf.mxu0 }
 0x2a3   :  { %v1344_v26 = vpop.f32.mrf.mxu1  ;;  %v1399_v30 = vmul.f32 0.35355338, %v1206_v25 }
 0x2a4   :  { %v5582_v31 = vmul.f32 0.35355338, %v1344_v26  ;;  %v4924_v27 = vpop.f32.mrf.mxu0 }
 0x2a5   :  { %v4942_v28 = vpop.f32.mrf.mxu1  ;;  %v1413_v32 = vsel %vm1027_vm2, %v1399_v30, -inf }
 0x2a6   :  { %v1422_v33 = vsel %vm1027_vm2, %v5582_v31, -inf  ;;  %1414 = vmax.xlane.f32.xlu0 %v1413_v32  ;;  %v1209_v36 = vpop.f32.mrf.mxu0 }
 0x2a7   :  { %v1347_v38 = vpop.f32.mrf.mxu1  ;;  %1423 = vmax.xlane.f32.xlu1 %v1422_v33 }
 0x2a8   :  { %v4925_v39 = vpop.f32.mrf.mxu0 }
 0x2a9   :  { %v4943_v40 = vpop.f32.mrf.mxu1 }
 0x2aa   :  { %v1298_v43 = vpop.f32.mrf.mxu0 }
 0x2ab   :  { %v1401_v45 = vmul.f32 0.35355338, %v1298_v43 }
 0x2ac   :  { %v4936_v49 = vpop.f32.mrf.mxu0 }
 0x2ad   :  { %v1419_v50 = vsel %vm1027_vm2, %v1401_v45, -inf }
 0x2ae   :  { %1420 = vmax.xlane.f32.xlu0 %v1419_v50  ;;  %v1301_v34 = vpop.f32.mrf.mxu0 }
 0x2b0   :  { %v4937_v35 = vpop.f32.mrf.mxu0 }
 0x2b2   :  { %v1390_v46 = vpop.f32.mrf.mxu0 }
 0x2b3   :  { %v5588_v47 = vmul.f32 0.35355338, %v1390_v46 }
 0x2b4   :  { %v4948_v48 = vpop.f32.mrf.mxu0 }
 0x2b5   :  { %v1425_v52 = vsel %vm1027_vm2, %v5588_v47, -inf }
 0x2b6   :  { %1426 = vmax.xlane.f32.xlu0 %v1425_v52  ;;  %v1393_v51 = vpop.f32.mrf.mxu0 }
 0x2b8   :  { %731 = vrot.lane.b32.xlu1 %v5393_v19, %s5311_s29  ;;  %v4949_v54 = vpop.f32.mrf.mxu0 }
 0x2bc   :  { %735 = vrot.lane.b32.xlu1 %v5389_v18, %s5311_s29 }
 0x2c0   :  { %725 = vrot.lane.b32.xlu1 %v5377_v15, %s5311_s29 }
 0x2cc   :  { %727 = vrot.lane.b32.xlu0 %v5387_v17, %s5311_s29 }
 0x31f   :  { %v1406_v55 = vpop.xlane.xlu0 %1405 }
 0x320   :  { %v1428_v41 = vsub.f32 %v1396_v59, %v1406_v55 }
 0x322   :  { %v1436_v56 = vmul.f32 1.442695, %v1428_v41 }
 0x323   :  { %v1412_v57 = vpop.xlane.xlu0 %1411 }
 0x324   :  { %5202 = vpow2.f32 %v1436_v56  ;;  %v1430_v58 = vsub.f32 %v1398_v44, %v1412_v57 }
 0x326   :  { %v1440_v60 = vmul.f32 1.442695, %v1430_v58 }
 0x327   :  { %v1409_v61 = vpop.xlane.xlu1 %1408 }
 0x328   :  { %5204 = vpow2.f32 %v1440_v60  ;;  %v1429_v19 = vsub.f32 %v1397_v6, %v1409_v61 }
 0x32a   :  { %v1438_v53 = vmul.f32 1.442695, %v1429_v19 }
 0x32b   :  { %v1418_v62 = vpop.xlane.xlu1 %1417 }
 0x32c   :  { %5206 = vpow2.f32 %v1438_v53  ;;  %v1432_v18 = vsub.f32 %v1400_v10, %v1418_v62 }
 0x32e   :  { %v1444_v63 = vmul.f32 1.442695, %v1432_v18 }
 0x32f   :  { %v1415_v15 = vpop.xlane.xlu0 %1414 }
 0x330   :  { %5208 = vpow2.f32 %v1444_v63  ;;  %v1431_v0 = vsub.f32 %v1399_v30, %v1415_v15  ;;  %v5608_v4 = vpop.xlane.xlu1 %1423 }
 0x331   :  { %v5600_v17 = vpop.eup %5202 }
 0x332   :  { %v1442_v59 = vmul.f32 1.442695, %v1431_v0  ;;  %v1452_v2 = vsel %vm1027_vm2, %v5600_v17, 0.0 }
 0x333   :  { %1453 = vadd.xlane.f32.xlu1 %v1452_v2 }
 0x334   :  { %5210 = vpow2.f32 %v1442_v59  ;;  %v732_v13 = vpop.permute.xlu1 %731 }
 0x335   :  { %v5604_v44 = vpop.eup %5204  ;;  %v747_v24 = vcombine.low %v724_v42, %v732_v13  ;;  %v748_v25 = vcombine.high %v724_v42, %v732_v13 }
 0x336   :  { %v1458_v3 = vsel %vm1027_vm2, %v5604_v44, 0.0 }
 0x337   :  { %v1421_v5 = vpop.xlane.xlu0 %1420  ;;  %1459 = vadd.xlane.f32.xlu0 %v1458_v3  ;;  %v755_v33 = vrot.slane %v747_v24, %v5416_v29  ;;  %v762_v36 = vrot.slane %v748_v25, %v5416_v29 }
 0x338   :  { %v1433_v6 = vsub.f32 %v1401_v45, %v1421_v5  ;;  %v736_v30 = vpop.permute.xlu1 %735 }
 0x339   :  { %v5610_v9 = vpop.eup %5206 }
 0x33a   :  { %v1446_v10 = vmul.f32 1.442695, %v1433_v6  ;;  %v1455_v11 = vsel %vm1027_vm2, %v5610_v9, 0.0 }
 0x33b   :  { %1456 = vadd.xlane.f32.xlu0 %v1455_v11 }
 0x33c   :  { %5212 = vpow2.f32 %v1446_v10 }
 0x33d   :  { %v5614_v12 = vpop.eup %5208 }
 0x33e   :  { %v1464_v14 = vsel %vm1027_vm2, %v5614_v12, 0.0 }
 0x33f   :  { %1465 = vadd.xlane.f32.xlu0 %v1464_v14  ;;  %v1427_v16 = vpop.xlane.xlu0 %1426  ;;  %v1434_v14 = vsub.f32 %v5582_v31, %v5608_v4 }
 0x341   :  { %v5618_v23 = vpop.eup %5210 }
 0x342   :  { %v1461_v26 = vsel %vm1027_vm2, %v5618_v23, 0.0 }
 0x343   :  { %1462 = vadd.xlane.f32.xlu1 %v1461_v26  ;;  %v728_v27 = vpop.permute.xlu0 %727 }
 0x344   :  { %v763_v28 = vcombine.low %v728_v27, %v736_v30  ;;  %v764_v32 = vcombine.high %v728_v27, %v736_v30 }
 0x346   :  { %v771_v38 = vrot.slane %v763_v28, %v5416_v29  ;;  %v778_v39 = vrot.slane %v764_v32, %v5416_v29 }
 0x348   :  { %v779_v40 = vcombine.low %v755_v33, %v771_v38  ;;  %v780_v43 = vcombine.high %v755_v33, %v771_v38  ;;  %v795_v45 = vcombine.low %v762_v36, %v778_v39  ;;  %v796_v49 = vcombine.high %v762_v36, %v778_v39 }
 0x349   :  { %v5626_v50 = vpop.eup %5212 }
 0x34a   :  { %v787_v34 = vrot.slane %v779_v40, %v5427_v37  ;;  %v794_v35 = vrot.slane %v780_v43, %v5427_v37  ;;  %v803_v46 = vrot.slane %v795_v45, %v5427_v37  ;;  %v810_v48 = vrot.slane %v796_v49, %v5427_v37 }
 0x34b   :  { %v1467_v52 = vsel %vm1027_vm2, %v5626_v50, 0.0 }
 0x34c   :  { %v883_v51 = vcombine.low %v787_v34, %v794_v35  ;;  %v4731_v54 = vcombine.high %v787_v34, %v794_v35  ;;  %v899_v55 = vcombine.low %v803_v46, %v810_v48  ;;  %v4732_v41 = vcombine.high %v803_v46, %v810_v48  ;;  %1468 = vadd.xlane.f32.xlu0 %v1467_v52 }
 0x34e   :  { %v890_v56 = vrot.slane %v883_v51, %v5416_v29  ;;  %v898_v42 = vrot.slane %v4731_v54, %v5416_v29  ;;  %v906_v57 = vrot.slane %v899_v55, %v5416_v29  ;;  %v914_v58 = vrot.slane %v4732_v41, %v5416_v29 }
 0x350   :  { %v915_v60 = vcombine.low %v890_v56, %v898_v42  ;;  %v931_v61 = vcombine.low %v906_v57, %v914_v58  ;;  %v916_v19 = vcombine.high %v890_v56, %v898_v42  ;;  %v932_v53 = vcombine.high %v906_v57, %v914_v58 }
 0x352   :  { %v923_v62 = vrot.slane %v915_v60, %v5427_v37  ;;  %v939_v18 = vrot.slane %v931_v61, %v5427_v37  ;;  %v930_v63 = vrot.slane %v916_v19, %v5427_v37  ;;  %v946_v15 = vrot.slane %v932_v53, %v5427_v37 }
 0x354   :  { %733 = vrot.lane.b32.xlu1 %v5405_v21, %s5311_s29  ;;  %v947_v0 = vcombine.low %v923_v62, %v939_v18  ;;  %v948_v59 = vcombine.high %v923_v62, %v939_v18  ;;  %v949_v2 = vcombine.low %v930_v63, %v946_v15  ;;  %v950_v3 = vcombine.high %v930_v63, %v946_v15 }
 0x355   :  { %v1435_v21 = vsub.f32 %v5588_v47, %v1427_v16  ;;  %v726_v47 = vpop.permute.xlu1 %725 }
 0x356   :  { %v1019_v5 = vpack.c.bf16 %v947_v0, %v947_v0  ;;  %v1020_v6 = vpack.c.bf16 %v948_v59, %v948_v59  ;;  %v1021_v28 = vpack.c.bf16 %v949_v2, %v949_v2  ;;  %v1022_v49 = vpack.c.bf16 %v950_v3, %v950_v3 }
 0x357   :  { %v1450_v13 = vmul.f32 1.442695, %v1435_v21 }
 0x358   :  { %737 = vrot.lane.b32.xlu1 %v5407_v22, %s5311_s29  ;;  %v1505_v10 = vsel %vm1503_vm3, %v1019_v5, 0  ;;  %v1551_v11 = vsel %vm1503_vm3, %v1020_v6, 0  ;;  %v1448_v22 = vmul.f32 1.442695, %v1434_v14  ;;  %v1597_v38 = vsel %vm1503_vm3, %v1021_v28, 0 }
 0x359   :  { %4951 = vmatpush3.bf16.msra.mxu1 %v1505_v10  ;;  %4957 = vmatpush3.bf16.msra.mxu0 %v1551_v11  ;;  %5214 = vpow2.f32 %v1450_v13  ;;  %v1643_v52 = vsel %vm1503_vm3, %v1022_v49, 0 }
 0x35a   :  { %4962 = vmatprep.subr.bf16.mxu1 %v5305_v1  ;;  %4968 = vmatprep.subr.bf16.mxu0 %v5305_v1  ;;  %5216 = vpow2.f32 %v1448_v22 }
 0x362   :  { %729 = vrot.lane.b32.xlu0 %v5399_v20, %s5311_s29 }
 0x366   :  { %v5655_v24 = vpop.eup %5214 }
 0x367   :  { %v1473_v25 = vsel %vm1027_vm2, %v5655_v24, 0.0  ;;  %v5659_v26 = vpop.eup %5216 }
 0x368   :  { %v1470_v20 = vsel %vm1027_vm2, %v5659_v26, 0.0 }
 0x37c   :  { %1474 = vadd.xlane.f32.xlu1 %v1473_v25 }
 0x381   :  { %1471 = vadd.xlane.f32.xlu0 %v1470_v20 }
 0x3bc   :  { %v1454_v16 = vpop.xlane.xlu1 %1453 }
 0x3bd   :  { %5218 = vrcp.f32 %v1454_v16 }
 0x3c0   :  { %v1460_v30 = vpop.xlane.xlu0 %1459 }
 0x3c1   :  { %5220 = vrcp.f32 %v1460_v30 }
 0x3c4   :  { %v1457_v31 = vpop.xlane.xlu0 %1456 }
 0x3c5   :  { %5222 = vrcp.f32 %v1457_v31 }
 0x3c8   :  { %v1466_v39 = vpop.xlane.xlu0 %1465 }
 0x3ca   :  { %v5219_v4 = vpop.eup %5218 }
 0x3cb   :  { %v1484_v27 = vmul.f32 %v5219_v4, %v5600_v17 }
 0x3cc   :  { %v1463_v32 = vpop.xlane.xlu1 %1462 }
 0x3cd   :  { %5224 = vrcp.f32 %v1463_v32  ;;  %v1492_v33 = vpack.c.bf16 %v1484_v27, %v1484_v27 }
 0x3ce   :  { %v5221_v36 = vpop.eup %5220  ;;  %5226 = vrcp.f32 %v1466_v39 }
 0x3cf   :  { %4953 = vmatmul.mubr.msk.bf16.vlgmr.msra.gmra.mxu1 %vm1027_vm2, %v1492_v33  ;;  %v1486_v40 = vmul.f32 %v5221_v36, %v5604_v44 }
 0x3d0   :  { %4963 = vmatpush3.bf16.msra.mxu1 %v1597_v38  ;;  %4964 = vmatprep.mubr.msk.bf16.mxu1 %vm5306_vm0, %v5305_v1  ;;  %v734_v17 = vpop.permute.xlu1 %733 }
 0x3d1   :  { %4974 = vmatprep.subr.bf16.mxu1 %v5305_v1  ;;  %v1494_v46 = vpack.c.bf16 %v1486_v40, %v1486_v40  ;;  %v815_v48 = vcombine.low %v726_v47, %v734_v17  ;;  %v816_v51 = vcombine.high %v726_v47, %v734_v17 }
 0x3d2   :  { %v5223_v43 = vpop.eup %5222 }
 0x3d3   :  { %v1485_v45 = vmul.f32 %v5223_v43, %v5610_v9  ;;  %v823_v56 = vrot.slane %v815_v48, %v5416_v29  ;;  %v830_v57 = vrot.slane %v816_v51, %v5416_v29 }
 0x3d4   :  { %v738_v44 = vpop.permute.xlu1 %737 }
 0x3d5   :  { %v1469_v34 = vpop.xlane.xlu0 %1468  ;;  %v1493_v35 = vpack.c.bf16 %v1485_v45, %v1485_v45 }
 0x3d6   :  { %5228 = vrcp.f32 %v1469_v34 }
 0x3d7   :  { %4959 = vmatmul.mubr.msk.bf16.vlgmr.msra.gmra.mxu0 %vm1027_vm2, %v1493_v35  ;;  %4965 = vmatmul.mubr.msk.bf16.vlgmr.msra.gmra.mxu1 %vm1027_vm2, %v1494_v46 }
 0x3d8   :  { %4969 = vmatpush3.bf16.msra.mxu0 %v1643_v52  ;;  %4970 = vmatprep.mubr.msk.bf16.mxu0 %vm5306_vm0, %v5305_v1 }
 0x3d9   :  { %v730_v54 = vpop.permute.xlu0 %729  ;;  %4980 = vmatprep.subr.bf16.mxu0 %v5305_v1  ;;  %4976 = vmatprep.mubr.msk.bf16.mxu1 %vm5306_vm0, %v5305_v1 }
 0x3da   :  { %v5225_v9 = vpop.eup %5224  ;;  %v831_v55 = vcombine.low %v730_v54, %v738_v44  ;;  %v832_v41 = vcombine.high %v730_v54, %v738_v44 }
 0x3db   :  { %v1487_v42 = vmul.f32 %v5225_v9, %v5618_v23  ;;  %v5227_v20 = vpop.eup %5226 }
 0x3dc   :  { %v839_v58 = vrot.slane %v831_v55, %v5416_v29  ;;  %v846_v60 = vrot.slane %v832_v41, %v5416_v29  ;;  %v1488_v39 = vmul.f32 %v5227_v20, %v5614_v12 }
 0x3dd   :  { %v1495_v61 = vpack.c.bf16 %v1487_v42, %v1487_v42 }
 0x3de   :  { %v847_v19 = vcombine.low %v823_v56, %v839_v58  ;;  %v848_v53 = vcombine.high %v823_v56, %v839_v58  ;;  %v863_v62 = vcombine.low %v830_v57, %v846_v60  ;;  %v864_v18 = vcombine.high %v830_v57, %v846_v60 }
 0x3df   :  { %4971 = vmatmul.mubr.msk.bf16.vlgmr.msra.gmra.mxu0 %vm1027_vm2, %v1495_v61  ;;  %v1496_v34 = vpack.c.bf16 %v1488_v39, %v1488_v39 }
 0x3e0   :  { %v855_v63 = vrot.slane %v847_v19, %v5427_v37  ;;  %v862_v15 = vrot.slane %v848_v53, %v5427_v37  ;;  %v871_v23 = vrot.slane %v863_v62, %v5427_v37  ;;  %v878_v0 = vrot.slane %v864_v18, %v5427_v37  ;;  %4982 = vmatprep.mubr.msk.bf16.mxu0 %vm5306_vm0, %v5305_v1 }
 0x3e2   :  { %v951_v59 = vcombine.low %v855_v63, %v862_v15  ;;  %v4733_v2 = vcombine.high %v855_v63, %v862_v15  ;;  %v967_v3 = vcombine.low %v871_v23, %v878_v0  ;;  %v4734_v5 = vcombine.high %v871_v23, %v878_v0 }
 0x3e3   :  { %v5229_v4 = vpop.eup %5228 }
 0x3e4   :  { %v958_v6 = vrot.slane %v951_v59, %v5416_v29  ;;  %v966_v10 = vrot.slane %v4733_v2, %v5416_v29  ;;  %v974_v11 = vrot.slane %v967_v3, %v5416_v29  ;;  %v982_v21 = vrot.slane %v4734_v5, %v5416_v29 }
 0x3e5   :  { %v1489_v40 = vmul.f32 %v5229_v4, %v5626_v50 }
 0x3e6   :  { %v983_v13 = vcombine.low %v958_v6, %v966_v10  ;;  %v999_v14 = vcombine.low %v974_v11, %v982_v21  ;;  %v984_v22 = vcombine.high %v958_v6, %v966_v10  ;;  %v1000_v25 = vcombine.high %v974_v11, %v982_v21 }
 0x3e7   :  { %v1497_v35 = vpack.c.bf16 %v1489_v40, %v1489_v40 }
 0x3e8   :  { %v991_v47 = vrot.slane %v983_v13, %v5427_v37  ;;  %v1007_v16 = vrot.slane %v999_v14, %v5427_v37  ;;  %v998_v30 = vrot.slane %v984_v22, %v5427_v37  ;;  %v1014_v31 = vrot.slane %v1000_v25, %v5427_v37 }
 0x3ea   :  { %v1015_v27 = vcombine.low %v991_v47, %v1007_v16  ;;  %v1016_v28 = vcombine.high %v991_v47, %v1007_v16  ;;  %v1017_v32 = vcombine.low %v998_v30, %v1014_v31  ;;  %v1018_v33 = vcombine.high %v998_v30, %v1014_v31 }
 0x3ec   :  { %v1023_v36 = vpack.c.bf16 %v1015_v27, %v1015_v27  ;;  %v1024_v38 = vpack.c.bf16 %v1016_v28, %v1016_v28  ;;  %v1025_v45 = vpack.c.bf16 %v1017_v32, %v1017_v32  ;;  %v1026_v49 = vpack.c.bf16 %v1018_v33, %v1018_v33 }
 0x3ee   :  { %v1689_v43 = vsel %vm1503_vm3, %v1023_v36, 0  ;;  %v1735_v17 = vsel %vm1503_vm3, %v1024_v38, 0  ;;  %v1781_v12 = vsel %vm1503_vm3, %v1025_v45, 0  ;;  %v1827_v50 = vsel %vm1503_vm3, %v1026_v49, 0 }
 0x3ef   :  { %4975 = vmatpush3.bf16.msra.mxu1 %v1689_v43  ;;  %4981 = vmatpush3.bf16.msra.mxu0 %v1735_v17 }
 0x3f0   :  { %4986 = vmatprep.subr.bf16.mxu1 %v5305_v1  ;;  %4992 = vmatprep.subr.bf16.mxu0 %v5305_v1 }
 0x3f2   :  { %4977 = vmatmul.mubr.msk.bf16.vlgmr.msra.gmra.mxu1 %vm1027_vm2, %v1496_v34  ;;  %4983 = vmatmul.mubr.msk.bf16.vlgmr.msra.gmra.mxu0 %vm1027_vm2, %v1497_v35 }
 0x3f3   :  { %4987 = vmatpush3.bf16.msra.mxu1 %v1781_v12  ;;  %4993 = vmatpush3.bf16.msra.mxu0 %v1827_v50 }
 0x3f4   :  { %4994 = vmatprep.mubr.msk.bf16.mxu0 %vm5306_vm0, %v5305_v1  ;;  %4988 = vmatprep.mubr.msk.bf16.mxu1 %vm5306_vm0, %v5305_v1 }
 0x3f5   :  { %4998 = vmatprep.subr.bf16.mxu1 %v5305_v1 }
 0x405   :  { %v1475_v46 = vpop.xlane.xlu1 %1474 }
 0x406   :  { %5230 = vrcp.f32 %v1475_v46 }
 0x40a   :  { %v1472_v48 = vpop.xlane.xlu0 %1471 }
 0x40b   :  { %5232 = vrcp.f32 %v1472_v48 }
 0x413   :  { %v5231_v52 = vpop.eup %5230 }
 0x414   :  { %v1491_v51 = vmul.f32 %v5231_v52, %v5655_v24 }
 0x416   :  { %v1499_v44 = vpack.c.bf16 %v1491_v51, %v1491_v51 }
 0x418   :  { %v5233_v54 = vpop.eup %5232  ;;  %4995 = vmatmul.mubr.msk.bf16.vlgmr.msra.gmra.mxu0 %vm1027_vm2, %v1499_v44 }
 0x419   :  { %v1490_v9 = vmul.f32 %v5233_v54, %v5659_v26 }
 0x41b   :  { %v1498_v55 = vpack.c.bf16 %v1490_v9, %v1490_v9 }
 0x41d   :  { %4989 = vmatmul.mubr.msk.bf16.vlgmr.msra.gmra.mxu1 %vm1027_vm2, %v1498_v55 }
 0x41e   :  { %5002 = vmatprep.mubr.msk.bf16.mxu1 %vm5306_vm0, %v5305_v1 }
 0x48f   :  { %v1541_v41 = vpop.f32.mrf.mxu1 }
 0x491   :  { %v4954_v56 = vpop.f32.mrf.mxu1 }
 0x493   :  { %v1544_v42 = vpop.f32.mrf.mxu1 }
 0x495   :  { %v4955_v57 = vpop.f32.mrf.mxu1 }
 0x497   :  { %v1587_v58 = vpop.f32.mrf.mxu0  ;;  %v1633_v60 = vpop.f32.mrf.mxu1 }
 0x498   :  { %v1869_v61 = vcombine.low %v1541_v41, %v1633_v60  ;;  %v1870_v24 = vcombine.high %v1541_v41, %v1633_v60 }
 0x499   :  { %v4960_v19 = vpop.f32.mrf.mxu0  ;;  %v4966_v53 = vpop.f32.mrf.mxu1 }
 0x49a   :  { %v1877_v2 = vrot.slane %v1869_v61, %v5416_v29  ;;  %v1884_v3 = vrot.slane %v1870_v24, %v5416_v29 }
 0x49b   :  { %v1590_v62 = vpop.f32.mrf.mxu0  ;;  %v1636_v18 = vpop.f32.mrf.mxu1 }
 0x49d   :  { %v4961_v63 = vpop.f32.mrf.mxu0  ;;  %v4967_v26 = vpop.f32.mrf.mxu1 }
 0x49f   :  { %v1679_v15 = vpop.f32.mrf.mxu0 }
 0x4a0   :  { %v1885_v23 = vcombine.low %v1587_v58, %v1679_v15  ;;  %v1886_v0 = vcombine.high %v1587_v58, %v1679_v15 }
 0x4a1   :  { %v4972_v59 = vpop.f32.mrf.mxu0 }
 0x4a2   :  { %v1893_v5 = vrot.slane %v1885_v23, %v5416_v29  ;;  %v1900_v6 = vrot.slane %v1886_v0, %v5416_v29 }
 0x4a3   :  { %v1682_v10 = vpop.f32.mrf.mxu0 }
 0x4a4   :  { %v1901_v11 = vcombine.low %v1877_v2, %v1893_v5  ;;  %v1902_v21 = vcombine.high %v1877_v2, %v1893_v5  ;;  %v1917_v13 = vcombine.low %v1884_v3, %v1900_v6  ;;  %v1918_v14 = vcombine.high %v1884_v3, %v1900_v6 }
 0x4a5   :  { %v4973_v22 = vpop.f32.mrf.mxu0 }
 0x4a6   :  { %v1909_v25 = vrot.slane %v1901_v11, %v5427_v37  ;;  %v1916_v20 = vrot.slane %v1902_v21, %v5427_v37  ;;  %v1925_v47 = vrot.slane %v1917_v13, %v5427_v37  ;;  %v1932_v16 = vrot.slane %v1918_v14, %v5427_v37 }
 0x4a8   :  { %v2005_v30 = vcombine.low %v1909_v25, %v1916_v20  ;;  %v4751_v31 = vcombine.high %v1909_v25, %v1916_v20  ;;  %v2021_v4 = vcombine.low %v1925_v47, %v1932_v16  ;;  %v4752_v27 = vcombine.high %v1925_v47, %v1932_v16  ;;  %v5188_v20 = vld [vmem:[%s6355_s2 + $0x8] sm:$0xff]  }
 0x4a9   :  { %4999 = vmatpush3.bf16.msra.mxu1 %v5188_v20 }
 0x4aa   :  { %v2012_v28 = vrot.slane %v2005_v30, %v5416_v29  ;;  %v2020_v32 = vrot.slane %v4751_v31, %v5416_v29  ;;  %v2028_v33 = vrot.slane %v2021_v4, %v5416_v29  ;;  %v2036_v36 = vrot.slane %v4752_v27, %v5416_v29  ;;  %5000 = vmatprep.subr.bf16.mxu1 %v5305_v1 }
 0x4ac   :  { %v2038_v38 = vcombine.high %v2012_v28, %v2020_v32  ;;  %v2054_v39 = vcombine.high %v2028_v33, %v2036_v36  ;;  %v2037_v40 = vcombine.low %v2012_v28, %v2020_v32  ;;  %v2053_v43 = vcombine.low %v2028_v33, %v2036_v36  ;;  %v5189_v33 = vld [vmem:[%s6355_s2] sm:$0xff]  }
 0x4ad   :  { %5001 = vmatpush3.bf16.msra.mxu1 %v5189_v33 }
 0x4ae   :  { %v5733_v17 = vrot.slane %v2038_v38, %v5427_v37  ;;  %v5736_v45 = vrot.slane %v2054_v39, %v5427_v37  ;;  %v5739_v49 = vrot.slane %v2037_v40, %v5427_v37  ;;  %v5742_v34 = vrot.slane %v2053_v43, %v5427_v37  ;;  %5014 = vmatprep.subr.bf16.mxu1 %v5305_v1 }
 0x4b0   :  { %v2071_v35 = vcombine.low %v5733_v17, %v5736_v45  ;;  %v2069_v12 = vcombine.low %v5739_v49, %v5742_v34  ;;  %v2070_v50 = vcombine.high %v5739_v49, %v5742_v34  ;;  %v2072_v46 = vcombine.high %v5733_v17, %v5736_v45  ;;  %v5798_v34 = vld [vmem:[%s6356_s3] sm:$0xff] }
 0x4b1   :  { %v2176_v49 = vsub.s32 2, %v5367_v7 }
 0x4b2   :  { %v1725_v48 = vpop.f32.mrf.mxu1  ;;  %v1771_v52 = vpop.f32.mrf.mxu0 }
 0x4b4   :  { %v4978_v51 = vpop.f32.mrf.mxu1  ;;  %v4984_v44 = vpop.f32.mrf.mxu0 }
 0x4b6   :  { %v1728_v54 = vpop.f32.mrf.mxu1  ;;  %v1774_v9 = vpop.f32.mrf.mxu0 }
 0x4b8   :  { %v4979_v55 = vpop.f32.mrf.mxu1  ;;  %v4985_v41 = vpop.f32.mrf.mxu0 }
 0x4d8   :  { %v1863_v56 = vpop.f32.mrf.mxu0 }
 0x4d9   :  { %v1953_v57 = vcombine.low %v1771_v52, %v1863_v56  ;;  %v1954_v58 = vcombine.high %v1771_v52, %v1863_v56 }
 0x4da   :  { %v4996_v42 = vpop.f32.mrf.mxu0 }
 0x4db   :  { %v1961_v18 = vrot.slane %v1953_v57, %v5416_v29  ;;  %v1968_v63 = vrot.slane %v1954_v58, %v5416_v29 }
 0x4dc   :  { %v1866_v60 = vpop.f32.mrf.mxu0 }
 0x4dd   :  { %v1817_v61 = vpop.f32.mrf.mxu1 }
 0x4de   :  { %v1937_v24 = vcombine.low %v1725_v48, %v1817_v61  ;;  %v1938_v19 = vcombine.high %v1725_v48, %v1817_v61  ;;  %v4997_v53 = vpop.f32.mrf.mxu0 }
 0x4df   :  { %v4990_v62 = vpop.f32.mrf.mxu1 }
 0x4e0   :  { %v1945_v26 = vrot.slane %v1937_v24, %v5416_v29  ;;  %v1952_v15 = vrot.slane %v1938_v19, %v5416_v29 }
 0x4e1   :  { %v1820_v23 = vpop.f32.mrf.mxu1 }
 0x4e2   :  { %v1969_v0 = vcombine.low %v1945_v26, %v1961_v18  ;;  %v1970_v59 = vcombine.high %v1945_v26, %v1961_v18  ;;  %v1985_v2 = vcombine.low %v1952_v15, %v1968_v63  ;;  %v1986_v3 = vcombine.high %v1952_v15, %v1968_v63  ;;  %v5279_v26 = vld [vmem:[%s6353_s0] sm:$0xff] }
 0x4e3   :  { %v4991_v5 = vpop.f32.mrf.mxu1 }
 0x4e4   :  { %v1977_v6 = vrot.slane %v1969_v0, %v5427_v37  ;;  %v1984_v10 = vrot.slane %v1970_v59, %v5427_v37  ;;  %v1993_v11 = vrot.slane %v1985_v2, %v5427_v37  ;;  %v2000_v21 = vrot.slane %v1986_v3, %v5427_v37  ;;  %v5280_v3 = vld [vmem:[%s6353_s0 + $0x8] sm:$0xff] }
 0x4e6   :  { %v2073_v13 = vcombine.low %v1977_v6, %v1984_v10  ;;  %v4753_v14 = vcombine.high %v1977_v6, %v1984_v10  ;;  %v2089_v22 = vcombine.low %v1993_v11, %v2000_v21  ;;  %v4754_v25 = vcombine.high %v1993_v11, %v2000_v21 }
 0x4e8   :  { %v2080_v47 = vrot.slane %v2073_v13, %v5416_v29  ;;  %v2088_v16 = vrot.slane %v4753_v14, %v5416_v29  ;;  %v2096_v30 = vrot.slane %v2089_v22, %v5416_v29  ;;  %v2104_v31 = vrot.slane %v4754_v25, %v5416_v29 }
 0x4ea   :  { %v2106_v4 = vcombine.high %v2080_v47, %v2088_v16  ;;  %v2122_v27 = vcombine.high %v2096_v30, %v2104_v31  ;;  %v2105_v28 = vcombine.low %v2080_v47, %v2088_v16  ;;  %v2121_v32 = vcombine.low %v2096_v30, %v2104_v31  ;;  %v5190_v30 = vld [vmem:[%s6354_s1 + $0x18] sm:$0xff]   ;;  %v5191_v31 = vld [vmem:[%s6354_s1 + $0x10] sm:$0xff]  }
 0x4eb   :  { %5006 = vmatprep.subr.bf16.mxu0 %v5190_v30 }
 0x4ec   :  { %v2120_v36 = vrot.slane %v2106_v4, %v5427_v37  ;;  %v2136_v38 = vrot.slane %v2122_v27, %v5427_v37  ;;  %v2113_v39 = vrot.slane %v2105_v28, %v5427_v37  ;;  %v2129_v40 = vrot.slane %v2121_v32, %v5427_v37  ;;  %5007 = vmatpush3.bf16.msra.mxu0 %v5190_v30 }
 0x4ed   :  { %5008 = vmatprep.subr.bf16.mxu0 %v5191_v31 }
 0x4ee   :  { %v2139_v43 = vcombine.low %v2120_v36, %v2136_v38  ;;  %v2138_v48 = vcombine.high %v2113_v39, %v2129_v40  ;;  %v2137_v52 = vcombine.low %v2113_v39, %v2129_v40  ;;  %v2140_v54 = vcombine.high %v2120_v36, %v2136_v38 }
 0x4ef   :  { %v2265_v38 = vsub.s32 6, %v5367_v7 }
 0x4f0   :  { %v5161_v51 = vpack.i.bf16 %v2139_v43, %v2071_v35  ;;  %v5156_v44 = vpack.i.bf16 %v2138_v48, %v2070_v50  ;;  %v5166_v9 = vpack.i.bf16 %v2140_v54, %v2072_v46  ;;  %5009 = vmatpush3.bf16.msra.mxu0 %v5191_v31  ;;  %v2271_v48 = vsub.s32 1, %v5367_v7 }
 0x4f1   :  { %5020 = vmatprep.subr.bf16.mxu0 %v5305_v1  ;;  %v2266_v43 = vrot.slane %v5798_v34, %v2265_v38 }
 0x4f2   :  { %5162 = vrot.lane.b32.xlu1 %v5161_v51, %s5314_s8  ;;  %5157 = vrot.lane.b32.xlu0 %v5156_v44, %s5315_s9 }
 0x4f6   :  { %5167 = vrot.lane.b32.xlu0 %v5166_v9, %s5316_s10 }
 0x564   :  { %v5163_v55 = vpop.permute.xlu1 %5162  ;;  %v5158_v41 = vpop.permute.xlu0 %5157 }
 0x565   :  { %v5160_v56 = vunpack.i.h.bf16 %v5158_v41  ;;  %v5159_v42 = vunpack.i.l.bf16 %v5158_v41  ;;  %v5165_v35 = vunpack.i.h.bf16 %v5163_v55  ;;  %v5164_v50 = vunpack.i.l.bf16 %v5163_v55  ;;  %v21_v41 = vld [vmem:[%s6353_s0 + $0x10] sm:$0xff] }
 0x567   :  { %v2165_v57 = vsel %vm1027_vm2, %v2069_v12, %v5159_v42  ;;  %v2166_v58 = vsel %vm1027_vm2, %v2137_v52, %v5160_v56  ;;  %v2177_v12 = vrot.slane %v5798_v34, %v2176_v49  ;;  %v56_v52 = vld [vmem:[%s6356_s3 + $0x8] sm:$0xf]  ;;  %v22_v56 = vld [vmem:[%s6353_s0 + $0x18] sm:$0xff] }
 0x568   :  { %v5168_v17 = vpop.permute.xlu0 %5167  ;;  %v2168_v60 = vsel %vm2167_vm4, %v2165_v57, %v5164_v50  ;;  %v2169_v61 = vsel %vm2167_vm4, %v2166_v58, %v5165_v35  ;;  %v2272_v9 = vrot.slane %v56_v52, %v2271_v48  ;;  %v2276_v50 = vpack.c.bf16 %v22_v56, %v21_v41 }
 0x569   :  { %v5170_v45 = vunpack.i.h.bf16 %v5168_v17  ;;  %v5169_v46 = vunpack.i.l.bf16 %v5168_v17  ;;  %v2280_v58 = vrot.slane %v5798_v34, %v2271_v48 }
 0x56b   :  { %v2171_v24 = vsel %vm2170_vm5, %v2168_v60, %v5169_v46  ;;  %v2172_v19 = vsel %vm2170_vm5, %v2169_v61, %v5170_v45 }
 0x56c   :  { %v2173_v53 = vpack.c.bf16 %v2172_v19, %v2171_v24 }
 0x56e   :  { %5003 = vmatmul.mubr.msk.bf16.vlgmr.msra.gmra.mxu1 %vm74_vm1, %v2173_v53 }
 0x56f   :  { %5016 = vmatprep.mubr.msk.bf16.mxu1 %vm5306_vm0, %v5305_v1 }
 0x62e   :  { %v2227_v62 = vpop.f32.mrf.mxu1 }
 0x62f   :  { %v2228_v18 = vadd.f32 %v2227_v62, %v2177_v12 }
 0x630   :  { %v5004_v63 = vpop.f32.mrf.mxu1 }
 0x631   :  { %v2234_v15 = vadd.f32 %v5279_v26, %v2228_v18 }
 0x632   :  { %v2230_v23 = vpop.f32.mrf.mxu1 }
 0x633   :  { %v2231_v0 = vadd.f32 %v2230_v23, %v2177_v12  ;;  %v2236_v59 = vsel %vm74_vm1, %v2234_v15, 0.0 }
 0x634   :  { %2237 = vadd.xlane.f32.xlu1 %v2236_v59  ;;  %v5005_v2 = vpop.f32.mrf.mxu1 }
 0x635   :  { %v2235_v5 = vadd.f32 %v5280_v3, %v2231_v0 }
 0x637   :  { %v2239_v6 = vsel %vm74_vm1, %v2235_v5, 0.0 }
 0x638   :  { %2240 = vadd.xlane.f32.xlu0 %v2239_v6 }
 0x6bd   :  { %v2238_v10 = vpop.xlane.xlu1 %2237 }
 0x6be   :  { %v2243_v11 = vmul.f32 0.03125, %v2238_v10 }
 0x6c0   :  { %v2245_v21 = vsub.f32 %v2234_v15, %v2243_v11 }
 0x6c1   :  { %v2241_v13 = vpop.xlane.xlu0 %2240 }
 0x6c2   :  { %v2244_v14 = vmul.f32 0.03125, %v2241_v13  ;;  %v2247_v22 = vmul.f32 %v2245_v21, %v2245_v21 }
 0x6c4   :  { %v2246_v25 = vsub.f32 %v2235_v5, %v2244_v14  ;;  %v2249_v20 = vsel %vm74_vm1, %v2247_v22, 0.0 }
 0x6c5   :  { %2250 = vadd.xlane.f32.xlu0 %v2249_v20 }
 0x6c6   :  { %v2248_v47 = vmul.f32 %v2246_v25, %v2246_v25 }
 0x6c8   :  { %v2252_v16 = vsel %vm74_vm1, %v2248_v47, 0.0 }
 0x6c9   :  { %2253 = vadd.xlane.f32.xlu1 %v2252_v16 }
 0x74e   :  { %v2251_v4 = vpop.xlane.xlu0 %2250 }
 0x74f   :  { %v2255_v27 = vmul.f32 0.03125, %v2251_v4 }
 0x751   :  { %v2257_v28 = vadd.f32 1e-05, %v2255_v27 }
 0x752   :  { %v2254_v32 = vpop.xlane.xlu1 %2253 }
 0x753   :  { %5234 = vrsqrt.f32 %v2257_v28  ;;  %v2256_v33 = vmul.f32 0.03125, %v2254_v32 }
 0x755   :  { %v2258_v36 = vadd.f32 1e-05, %v2256_v33 }
 0x757   :  { %5236 = vrsqrt.f32 %v2258_v36 }
 0x760   :  { %v5235_v39 = vpop.eup %5234 }
 0x761   :  { %v2261_v40 = vmul.f32 %v5235_v39, %v2245_v21 }
 0x763   :  { %v2267_v54 = vmul.f32 %v2266_v43, %v2261_v40 }
 0x764   :  { %v5237_v51 = vpop.eup %5236 }
 0x765   :  { %v2262_v44 = vmul.f32 %v5237_v51, %v2246_v25  ;;  %v5832_v42 = vadd.f32 %v2272_v9, %v2267_v54 }
 0x767   :  { %v2268_v55 = vmul.f32 %v2266_v43, %v2262_v44 }
 0x769   :  { %v5834_v35 = vadd.f32 %v2272_v9, %v2268_v55 }
 0x76b   :  { %v2275_v57 = vpack.c.bf16 %v5834_v35, %v5832_v42 }
 0x76d   :  { %5010 = vmatprep.mubr.msk.bf16.mxu0 %vm74_vm1, %v2275_v57 }
 0x76e   :  { %5011 = vmatmul.mubr.msk.bf16.vlgmr.msra.gmra.mxu0 %vm74_vm1, %v2276_v50 }
 0x76f   :  { %5022 = vmatprep.mubr.msk.bf16.mxu0 %vm5306_vm0, %v5305_v1 }
 0x82e   :  { %v5012_v17 = vpop.f32.mrf.mxu0 }
 0x82f   :  { %v2342_v45 = vadd.f32 %v5012_v17, %v2280_v58 }
 0x830   :  { %v2333_v46 = vpop.f32.mrf.mxu0 }
 0x831   :  { %v5843_v60 = vadd.f32 %v2333_v46, %v2280_v58  ;;  %2654 = vrot.lane.b32.xlu1 %v2342_v45, %s5309_s27  ;;  %2650 = vrot.lane.b32.xlu0 %v2342_v45, %s5308_s26 }
 0x832   :  { %v5013_v61 = vpop.f32.mrf.mxu0 }
 0x833   :  { %v5847_v24 = vadd.f32 %v5013_v61, %v2280_v58 }
 0x834   :  { %v2336_v62 = vpop.f32.mrf.mxu0 }
 0x835   :  { %2658 = vrot.lane.b32.xlu1 %v2342_v45, %s5307_s25  ;;  %2652 = vrot.lane.b32.xlu0 %v5847_v24, %s5308_s26  ;;  %v5880_v26 = vadd.f32 %v2336_v62, %v2280_v58 }
 0x839   :  { %2656 = vrot.lane.b32.xlu1 %v5847_v24, %s5309_s27  ;;  %2660 = vrot.lane.b32.xlu0 %v5847_v24, %s5307_s25 }
 0x83d   :  { %2662 = vrot.lane.b32.xlu1 %v2342_v45, %s5310_s28 }
 0x8a3   :  { %v2655_v19 = vpop.permute.xlu1 %2654  ;;  %v2651_v53 = vpop.permute.xlu0 %2650 }
 0x8a4   :  { %2670 = vrot.lane.b32.xlu1 %v2655_v19, %s5310_s28  ;;  %2666 = vrot.lane.b32.xlu0 %v2651_v53, %s5310_s28 }
 0x8a7   :  { %v2659_v34 = vpop.permute.xlu1 %2658  ;;  %v5866_v12 = vpop.permute.xlu0 %2652 }
 0x8a8   :  { %2674 = vrot.lane.b32.xlu0 %v2659_v34, %s5310_s28  ;;  %2350 = vrot.lane.b32.xlu1 %v5843_v60, %s5308_s26 }
 0x8ab   :  { %v5872_v18 = vpop.permute.xlu1 %2656  ;;  %v5874_v63 = vpop.permute.xlu0 %2660 }
 0x8ac   :  { %2356 = vrot.lane.b32.xlu0 %v5843_v60, %s5309_s27  ;;  %2362 = vrot.lane.b32.xlu1 %v5843_v60, %s5307_s25 }
 0x8af   :  { %v2663_v15 = vpop.permute.xlu1 %2662 }
 0x8b0   :  { %2664 = vrot.lane.b32.xlu0 %v5847_v24, %s5310_s28  ;;  %2668 = vrot.lane.b32.xlu1 %v5866_v12, %s5310_s28 }
 0x8b4   :  { %2672 = vrot.lane.b32.xlu0 %v5872_v18, %s5310_s28  ;;  %2676 = vrot.lane.b32.xlu1 %v5874_v63, %s5310_s28 }
 0x8b8   :  { %2352 = vrot.lane.b32.xlu0 %v5880_v26, %s5308_s26  ;;  %2358 = vrot.lane.b32.xlu1 %v5880_v26, %s5309_s27 }
 0x8bc   :  { %2364 = vrot.lane.b32.xlu0 %v5880_v26, %s5307_s25  ;;  %2970 = vrot.lane.b32.xlu1 %v2651_v53, %s5311_s29 }
 0x8c0   :  { %2966 = vrot.lane.b32.xlu0 %v2342_v45, %s5311_s29  ;;  %2974 = vrot.lane.b32.xlu1 %v2655_v19, %s5311_s29 }
 0x8c4   :  { %2978 = vrot.lane.b32.xlu0 %v2659_v34, %s5311_s29 }
 0x916   :  { %v2671_v23 = vpop.permute.xlu1 %2670  ;;  %v2667_v0 = vpop.permute.xlu0 %2666 }
 0x917   :  { %v2686_v59 = vcombine.low %v2663_v15, %v2671_v23  ;;  %v2687_v2 = vcombine.high %v2663_v15, %v2671_v23 }
 0x919   :  { %v2694_v11 = vrot.slane %v2686_v59, %v5416_v29  ;;  %v2701_v21 = vrot.slane %v2687_v2, %v5416_v29 }
 0x91a   :  { %v2675_v3 = vpop.permute.xlu0 %2674  ;;  %v2351_v5 = vpop.permute.xlu1 %2350 }
 0x91b   :  { %v2702_v6 = vcombine.low %v2667_v0, %v2675_v3  ;;  %v2703_v10 = vcombine.high %v2667_v0, %v2675_v3 }
 0x91d   :  { %v2710_v13 = vrot.slane %v2702_v6, %v5416_v29  ;;  %v2717_v14 = vrot.slane %v2703_v10, %v5416_v29 }
 0x91e   :  { %v2357_v22 = vpop.permute.xlu0 %2356  ;;  %v2363_v25 = vpop.permute.xlu1 %2362 }
 0x91f   :  { %v2718_v20 = vcombine.low %v2694_v11, %v2710_v13  ;;  %v2719_v47 = vcombine.high %v2694_v11, %v2710_v13  ;;  %v2734_v16 = vcombine.low %v2701_v21, %v2717_v14  ;;  %v2735_v30 = vcombine.high %v2701_v21, %v2717_v14 }
 0x920   :  { %v2368_v31 = vcombine.low %v5843_v60, %v2357_v22  ;;  %v2369_v4 = vcombine.high %v5843_v60, %v2357_v22  ;;  %v2384_v27 = vcombine.low %v2351_v5, %v2363_v25  ;;  %v2385_v28 = vcombine.high %v2351_v5, %v2363_v25 }
 0x921   :  { %v2726_v32 = vrot.slane %v2718_v20, %v5427_v37  ;;  %v2733_v33 = vrot.slane %v2719_v47, %v5427_v37  ;;  %v2742_v36 = vrot.slane %v2734_v16, %v5427_v37  ;;  %v2749_v38 = vrot.slane %v2735_v30, %v5427_v37 }
 0x922   :  { %v2376_v39 = vrot.slane %v2368_v31, %v5416_v29  ;;  %v2383_v40 = vrot.slane %v2369_v4, %v5416_v29  ;;  %v2392_v43 = vrot.slane %v2384_v27, %v5416_v29  ;;  %v2399_v48 = vrot.slane %v2385_v28, %v5416_v29  ;;  %v2665_v52 = vpop.permute.xlu0 %2664  ;;  %v2669_v51 = vpop.permute.xlu1 %2668 }
 0x923   :  { %v2822_v41 = vcombine.low %v2726_v32, %v2733_v33  ;;  %v4766_v56 = vcombine.high %v2726_v32, %v2733_v33  ;;  %v2838_v50 = vcombine.low %v2742_v36, %v2749_v38  ;;  %v4767_v57 = vcombine.high %v2742_v36, %v2749_v38 }
 0x924   :  { %v2400_v44 = vcombine.low %v2376_v39, %v2392_v43  ;;  %v2401_v54 = vcombine.high %v2376_v39, %v2392_v43  ;;  %v2416_v9 = vcombine.low %v2383_v40, %v2399_v48  ;;  %v2417_v55 = vcombine.high %v2383_v40, %v2399_v48 }
 0x925   :  { %v5915_v5 = vrot.slane %v2822_v41, %v5416_v29  ;;  %v5918_v6 = vrot.slane %v4766_v56, %v5416_v29  ;;  %v5921_v10 = vrot.slane %v2838_v50, %v5416_v29  ;;  %v5924_v11 = vrot.slane %v4767_v57, %v5416_v29 }
 0x926   :  { %v2408_v58 = vrot.slane %v2400_v44, %v5427_v37  ;;  %v2415_v17 = vrot.slane %v2401_v54, %v5427_v37  ;;  %v2424_v45 = vrot.slane %v2416_v9, %v5427_v37  ;;  %v2431_v46 = vrot.slane %v2417_v55, %v5427_v37  ;;  %v2673_v60 = vpop.permute.xlu0 %2672  ;;  %v2677_v61 = vpop.permute.xlu1 %2676 }
 0x927   :  { %v2754_v19 = vcombine.low %v2665_v52, %v2673_v60  ;;  %v2755_v53 = vcombine.high %v2665_v52, %v2673_v60  ;;  %v2770_v34 = vcombine.low %v2669_v51, %v2677_v61  ;;  %v2771_v62 = vcombine.high %v2669_v51, %v2677_v61 }
 0x928   :  { %v2504_v15 = vcombine.low %v2408_v58, %v2415_v17  ;;  %v4762_v23 = vcombine.high %v2408_v58, %v2415_v17  ;;  %v2520_v25 = vcombine.low %v2424_v45, %v2431_v46  ;;  %v4763_v20 = vcombine.high %v2424_v45, %v2431_v46 }
 0x929   :  { %v2762_v0 = vrot.slane %v2754_v19, %v5416_v29  ;;  %v2769_v59 = vrot.slane %v2755_v53, %v5416_v29  ;;  %v2778_v2 = vrot.slane %v2770_v34, %v5416_v29  ;;  %v2785_v3 = vrot.slane %v2771_v62, %v5416_v29 }
 0x92a   :  { %v2353_v21 = vpop.permute.xlu0 %2352  ;;  %v2359_v13 = vpop.permute.xlu1 %2358  ;;  %v5927_v14 = vrot.slane %v2504_v15, %v5416_v29  ;;  %v5930_v22 = vrot.slane %v4762_v23, %v5416_v29  ;;  %v2854_v33 = vcombine.low %v5915_v5, %v5918_v6  ;;  %v2870_v36 = vcombine.low %v5921_v10, %v5924_v11 }
 0x92b   :  { %v2786_v47 = vcombine.low %v2762_v0, %v2778_v2  ;;  %v2787_v16 = vcombine.high %v2762_v0, %v2778_v2  ;;  %v2802_v30 = vcombine.low %v2769_v59, %v2785_v3  ;;  %v2803_v31 = vcombine.high %v2769_v59, %v2785_v3 }
 0x92c   :  { %v2436_v4 = vcombine.low %v5880_v26, %v2359_v13  ;;  %v2437_v27 = vcombine.high %v5880_v26, %v2359_v13  ;;  %v5939_v38 = vrot.slane %v2520_v25, %v5416_v29  ;;  %v5942_v39 = vrot.slane %v4763_v20, %v5416_v29 }
 0x92d   :  { %v2536_v40 = vcombine.low %v5927_v14, %v5930_v22  ;;  %v2794_v43 = vrot.slane %v2786_v47, %v5427_v37  ;;  %v2801_v26 = vrot.slane %v2787_v16, %v5427_v37  ;;  %v5949_v51 = vrot.slane %v2802_v30, %v5427_v37 }
 0x92e   :  { %v2365_v28 = vpop.permute.xlu0 %2364  ;;  %v2971_v32 = vpop.permute.xlu1 %2970  ;;  %v5952_v44 = vrot.slane %v2803_v31, %v5427_v37  ;;  %v2444_v54 = vrot.slane %v2436_v4, %v5416_v29  ;;  %v2451_v9 = vrot.slane %v2437_v27, %v5416_v29  ;;  %v2862_v56 = vrot.slane %v2854_v33, %v5427_v37 }
 0x92f   :  { %v2452_v48 = vcombine.low %v2353_v21, %v2365_v28  ;;  %v2453_v52 = vcombine.high %v2353_v21, %v2365_v28  ;;  %v2878_v50 = vrot.slane %v2870_v36, %v5427_v37  ;;  %v2537_v17 = vcombine.high %v5927_v14, %v5930_v22 }
 0x930   :  { %v2552_v45 = vcombine.low %v5939_v38, %v5942_v39  ;;  %v2553_v62 = vcombine.high %v5939_v38, %v5942_v39  ;;  %v2890_v15 = vcombine.low %v2794_v43, %v2801_v26  ;;  %v4768_v59 = vcombine.high %v2794_v43, %v2801_v26 }
 0x931   :  { %v2460_v55 = vrot.slane %v2452_v48, %v5416_v29  ;;  %v2467_v41 = vrot.slane %v2453_v52, %v5416_v29  ;;  %v2886_v23 = vcombine.low %v2862_v56, %v2878_v50  ;;  %v2887_v0 = vcombine.high %v2862_v56, %v2878_v50 }
 0x932   :  { %v2967_v57 = vpop.permute.xlu0 %2966  ;;  %v2975_v58 = vpop.permute.xlu1 %2974  ;;  %v2906_v2 = vcombine.low %v5949_v51, %v5952_v44  ;;  %v4769_v26 = vcombine.high %v5949_v51, %v5952_v44  ;;  %v2544_v48 = vrot.slane %v2536_v40, %v5427_v37  ;;  %v2560_v52 = vrot.slane %v2552_v45, %v5427_v37 }
 0x933   :  { %v2990_v46 = vcombine.low %v2967_v57, %v2975_v58  ;;  %v2991_v60 = vcombine.high %v2967_v57, %v2975_v58  ;;  %v2468_v61 = vcombine.low %v2444_v54, %v2460_v55  ;;  %v2469_v19 = vcombine.high %v2444_v54, %v2460_v55 }
 0x934   :  { %v2484_v53 = vcombine.low %v2451_v9, %v2467_v41  ;;  %v2485_v34 = vcombine.high %v2451_v9, %v2467_v41  ;;  %v2958_v25 = vpack.c.bf16 %v2886_v23, %v2886_v23  ;;  %v2959_v20 = vpack.c.bf16 %v2887_v0, %v2887_v0 }
 0x935   :  { %v2476_v3 = vrot.slane %v2468_v61, %v5427_v37  ;;  %v2483_v21 = vrot.slane %v2469_v19, %v5427_v37  ;;  %v2998_v4 = vrot.slane %v2990_v46, %v5416_v29  ;;  %v3005_v27 = vrot.slane %v2991_v60, %v5416_v29 }
 0x936   :  { %v2979_v13 = vpop.permute.xlu0 %2978  ;;  %v2492_v30 = vrot.slane %v2484_v53, %v5427_v37  ;;  %v2499_v31 = vrot.slane %v2485_v34, %v5427_v37  ;;  %v3274_v28 = vsel %vm1027_vm2, %v2958_v25, 0  ;;  %v3320_v33 = vsel %vm1027_vm2, %v2959_v20, 0 }
 0x937   :  { %v3006_v47 = vcombine.low %v2971_v32, %v2979_v13  ;;  %v3007_v16 = vcombine.high %v2971_v32, %v2979_v13  ;;  %v2572_v32 = vcombine.low %v2476_v3, %v2483_v21  ;;  %5015 = vmatpush3.bf16.xpose.msra.mxu1 %v3274_v28  ;;  %5021 = vmatpush3.bf16.xpose.msra.mxu0 %v3320_v33 }
 0x938   :  { %v5983_v56 = vrot.slane %v2890_v15, %v5416_v29  ;;  %v5986_v50 = vrot.slane %v4768_v59, %v5416_v29  ;;  %v5989_v57 = vrot.slane %v2906_v2, %v5416_v29  ;;  %v4764_v51 = vcombine.high %v2476_v3, %v2483_v21  ;;  %5026 = vmatprep.subr.bf16.mxu1 %v5305_v1 }
 0x939   :  { %v3014_v36 = vrot.slane %v3006_v47, %v5416_v29  ;;  %v3021_v43 = vrot.slane %v3007_v16, %v5416_v29  ;;  %v2588_v40 = vcombine.low %v2492_v30, %v2499_v31  ;;  %v4765_v44 = vcombine.high %v2492_v30, %v2499_v31  ;;  %5032 = vmatprep.subr.bf16.mxu0 %v5305_v1 }
 0x93a   :  { %v2568_v46 = vcombine.low %v2544_v48, %v2560_v52  ;;  %v2569_v60 = vcombine.high %v2544_v48, %v2560_v52  ;;  %v2855_v61 = vcombine.high %v5915_v5, %v5918_v6  ;;  %v2871_v19 = vcombine.high %v5921_v10, %v5924_v11 }
 0x93b   :  { %v3022_v54 = vcombine.low %v2998_v4, %v3014_v36  ;;  %v3023_v9 = vcombine.high %v2998_v4, %v3014_v36  ;;  %v3038_v55 = vcombine.low %v3005_v27, %v3021_v43  ;;  %v3039_v41 = vcombine.high %v3005_v27, %v3021_v43 }
 0x93c   :  { %v2921_v53 = vrot.slane %v4769_v26, %v5416_v29  ;;  %v6001_v34 = vrot.slane %v2572_v32, %v5416_v29  ;;  %v2640_v0 = vpack.c.bf16 %v2568_v46, %v2568_v46  ;;  %v2641_v59 = vpack.c.bf16 %v2569_v60, %v2569_v60 }
 0x93d   :  { %v3030_v58 = vrot.slane %v3022_v54, %v5427_v37  ;;  %v3037_v45 = vrot.slane %v3023_v9, %v5427_v37  ;;  %v3046_v15 = vrot.slane %v3038_v55, %v5427_v37  ;;  %v3053_v23 = vrot.slane %v3039_v41, %v5427_v37 }
 0x93e   :  { %v2869_v2 = vrot.slane %v2855_v61, %v5427_v37  ;;  %v2885_v3 = vrot.slane %v2871_v19, %v5427_v37  ;;  %v6008_v5 = vrot.slane %v4764_v51, %v5416_v29  ;;  %v6011_v6 = vrot.slane %v2588_v40, %v5416_v29  ;;  %5017 = vmatmul.mubr.msk.bf16.vlgmr.msra.gmra.mxu1 %vm1027_vm2, %v2640_v0 }
 0x93f   :  { %v6014_v10 = vrot.slane %v4765_v44, %v5416_v29  ;;  %v3126_v11 = vcombine.low %v3030_v58, %v3037_v45  ;;  %v4770_v21 = vcombine.high %v3030_v58, %v3037_v45  ;;  %5023 = vmatmul.mubr.msk.bf16.vlgmr.msra.gmra.mxu0 %vm1027_vm2, %v2641_v59  ;;  %v3142_v20 = vcombine.low %v3046_v15, %v3053_v23 }
 0x940   :  { %v2888_v13 = vcombine.low %v2869_v2, %v2885_v3  ;;  %v2889_v25 = vcombine.high %v2869_v2, %v2885_v3  ;;  %5028 = vmatprep.mubr.msk.bf16.mxu1 %vm5306_vm0, %v5305_v1  ;;  %5034 = vmatprep.mubr.msk.bf16.mxu0 %vm5306_vm0, %v5305_v1  ;;  %v2922_v47 = vcombine.low %v5983_v56, %v5986_v50 }
 0x941   :  { %v2938_v16 = vcombine.low %v5989_v57, %v2921_v53  ;;  %v2551_v4 = vrot.slane %v2537_v17, %v5427_v37  ;;  %v2567_v27 = vrot.slane %v2553_v62, %v5427_v37  ;;  %v2604_v28 = vcombine.low %v6001_v34, %v6008_v5 }
 0x942   :  { %v2960_v30 = vpack.c.bf16 %v2888_v13, %v2888_v13  ;;  %v2961_v31 = vpack.c.bf16 %v2889_v25, %v2889_v25  ;;  %v4771_v33 = vcombine.high %v3046_v15, %v3053_v23  ;;  %v2930_v36 = vrot.slane %v2922_v47, %v5427_v37 }
 0x943   :  { %v2946_v43 = vrot.slane %v2938_v16, %v5427_v37  ;;  %v2620_v26 = vcombine.low %v6011_v6, %v6014_v10  ;;  %v3133_v32 = vrot.slane %v3126_v11, %v5416_v29  ;;  %v3141_v38 = vrot.slane %v4770_v21, %v5416_v29 }
 0x944   :  { %v3366_v14 = vsel %vm1027_vm2, %v2960_v30, 0  ;;  %v3412_v22 = vsel %vm1027_vm2, %v2961_v31, 0  ;;  %v3149_v39 = vrot.slane %v3142_v20, %v5416_v29  ;;  %v2570_v62 = vcombine.low %v2551_v4, %v2567_v27 }
 0x945   :  { %5027 = vmatpush3.bf16.xpose.msra.mxu1 %v3366_v14  ;;  %5033 = vmatpush3.bf16.xpose.msra.mxu0 %v3412_v22  ;;  %v2954_v17 = vcombine.low %v2930_v36, %v2946_v43  ;;  %v2571_v48 = vcombine.high %v2551_v4, %v2567_v27  ;;  %v2955_v52 = vcombine.high %v2930_v36, %v2946_v43 }
 0x946   :  { %5038 = vmatprep.subr.bf16.mxu1 %v5305_v1  ;;  %5044 = vmatprep.subr.bf16.mxu0 %v5305_v1  ;;  %v3157_v54 = vrot.slane %v4771_v33, %v5416_v29  ;;  %v2923_v55 = vcombine.high %v5983_v56, %v5986_v50  ;;  %v2939_v41 = vcombine.high %v5989_v57, %v2921_v53 }
 0x947   :  { %v2962_v9 = vpack.c.bf16 %v2954_v17, %v2954_v17  ;;  %v2963_v51 = vpack.c.bf16 %v2955_v52, %v2955_v52  ;;  %v3159_v58 = vcombine.high %v3133_v32, %v3141_v38  ;;  %v2642_v45 = vpack.c.bf16 %v2570_v62, %v2570_v62 }
 0x948   :  { %v2937_v40 = vrot.slane %v2923_v55, %v5427_v37  ;;  %v2953_v44 = vrot.slane %v2939_v41, %v5427_v37  ;;  %v2643_v46 = vpack.c.bf16 %v2571_v48, %v2571_v48  ;;  %v2612_v60 = vrot.slane %v2604_v28, %v5427_v37 }
 0x949   :  { %v2628_v61 = vrot.slane %v2620_v26, %v5427_v37  ;;  %v3458_v19 = vsel %vm1027_vm2, %v2962_v9, 0  ;;  %v3158_v23 = vcombine.low %v3133_v32, %v3141_v38  ;;  %v3174_v0 = vcombine.low %v3149_v39, %v3157_v54 }
 0x94a   :  { %v2956_v15 = vcombine.low %v2937_v40, %v2953_v44  ;;  %v3504_v56 = vsel %vm1027_vm2, %v2963_v51, 0  ;;  %v2957_v50 = vcombine.high %v2937_v40, %v2953_v44  ;;  %v3173_v57 = vrot.slane %v3159_v58, %v5427_v37 }
 0x94b   :  { %v3175_v53 = vcombine.high %v3149_v39, %v3157_v54  ;;  %v2605_v59 = vcombine.high %v6001_v34, %v6008_v5  ;;  %v2621_v2 = vcombine.high %v6011_v6, %v6014_v10  ;;  %v2636_v3 = vcombine.low %v2612_v60, %v2628_v61 }
 0x94c   :  { %5029 = vmatmul.mubr.msk.bf16.vlgmr.msra.gmra.mxu1 %vm1027_vm2, %v2642_v45  ;;  %5035 = vmatmul.mubr.msk.bf16.vlgmr.msra.gmra.mxu0 %vm1027_vm2, %v2643_v46  ;;  %v2637_v11 = vcombine.high %v2612_v60, %v2628_v61  ;;  %v3166_v34 = vrot.slane %v3158_v23, %v5427_v37  ;;  %v3182_v5 = vrot.slane %v3174_v0, %v5427_v37 }
 0x94d   :  { %5039 = vmatpush3.bf16.xpose.msra.mxu1 %v3458_v19  ;;  %5045 = vmatpush3.bf16.xpose.msra.mxu0 %v3504_v56  ;;  %v3189_v21 = vrot.slane %v3175_v53, %v5427_v37  ;;  %v2964_v6 = vpack.c.bf16 %v2956_v15, %v2956_v15  ;;  %v2965_v10 = vpack.c.bf16 %v2957_v50, %v2957_v50 }
 0x94e   :  { %5040 = vmatprep.mubr.msk.bf16.mxu1 %vm5306_vm0, %v5305_v1  ;;  %5046 = vmatprep.mubr.msk.bf16.mxu0 %vm5306_vm0, %v5305_v1  ;;  %v2644_v20 = vpack.c.bf16 %v2636_v3, %v2636_v3  ;;  %v2645_v47 = vpack.c.bf16 %v2637_v11, %v2637_v11  ;;  %v2619_v16 = vrot.slane %v2605_v59, %v5427_v37 }
 0x94f   :  { %5050 = vmatprep.subr.bf16.mxu1 %v5305_v1  ;;  %5056 = vmatprep.subr.bf16.mxu0 %v5305_v1  ;;  %v6072_v13 = vcombine.low %v3173_v57, %v3189_v21  ;;  %v6074_v25 = vcombine.high %v3173_v57, %v3189_v21  ;;  %v2635_v30 = vrot.slane %v2621_v2, %v5427_v37  ;;  %v3550_v31 = vsel %vm1027_vm2, %v2964_v6, 0 }
 0x950   :  { %v3596_v4 = vsel %vm1027_vm2, %v2965_v10, 0  ;;  %v3190_v27 = vcombine.low %v3166_v34, %v3182_v5  ;;  %v3191_v28 = vcombine.high %v3166_v34, %v3182_v5 }
 0x951   :  { %v2638_v33 = vcombine.low %v2619_v16, %v2635_v30  ;;  %v2639_v36 = vcombine.high %v2619_v16, %v2635_v30 }
 0x952   :  { %v3262_v43 = vpack.c.bf16 %v3190_v27, %v3190_v27  ;;  %v3263_v26 = vpack.c.bf16 %v3191_v28, %v3191_v28 }
 0x953   :  { %v2646_v32 = vpack.c.bf16 %v2638_v33, %v2638_v33  ;;  %v2647_v14 = vpack.c.bf16 %v2639_v36, %v2639_v36 }
 0x954   :  { %5041 = vmatmul.mubr.msk.bf16.vlgmr.msra.gmra.mxu1 %vm1027_vm2, %v2644_v20  ;;  %5047 = vmatmul.mubr.msk.bf16.vlgmr.msra.gmra.mxu0 %vm1027_vm2, %v2645_v47  ;;  %v3746_v22 = vsel %vm1503_vm3, %v3262_v43, 0  ;;  %v3792_v38 = vsel %vm1503_vm3, %v3263_v26, 0 }
 0x955   :  { %5051 = vmatpush3.bf16.xpose.msra.mxu1 %v3550_v31  ;;  %5057 = vmatpush3.bf16.xpose.msra.mxu0 %v3596_v4 }
 0x956   :  { %5052 = vmatprep.mubr.msk.bf16.mxu1 %vm5306_vm0, %v5305_v1  ;;  %5058 = vmatprep.mubr.msk.bf16.mxu0 %vm5306_vm0, %v5305_v1 }
 0x957   :  { %5062 = vmatprep.subr.bf16.mxu1 %v5305_v1  ;;  %5068 = vmatprep.subr.bf16.mxu0 %v5305_v1 }
 0x95c   :  { %5053 = vmatmul.mubr.msk.bf16.vlgmr.msra.gmra.mxu1 %vm1027_vm2, %v2646_v32  ;;  %5059 = vmatmul.mubr.msk.bf16.vlgmr.msra.gmra.mxu0 %vm1027_vm2, %v2647_v14 }
 0x95d   :  { %5063 = vmatpush3.bf16.msra.mxu1 %v3746_v22  ;;  %5069 = vmatpush3.bf16.msra.mxu0 %v3792_v38 }
 0x95e   :  { %5064 = vmatprep.mubr.msk.bf16.mxu1 %vm5306_vm0, %v5305_v1  ;;  %5070 = vmatprep.mubr.msk.bf16.mxu0 %vm5306_vm0, %v5305_v1 }
 0x95f   :  { %5074 = vmatprep.subr.bf16.mxu1 %v5305_v1  ;;  %5080 = vmatprep.subr.bf16.mxu0 %v5305_v1 }
 0x9fe   :  { %v3310_v39 = vpop.f32.mrf.mxu1 }
 0x9ff   :  { %v3356_v17 = vpop.f32.mrf.mxu0  ;;  %v3638_v62 = vmul.f32 0.35355338, %v3310_v39 }
 0xa00   :  { %v3639_v48 = vmul.f32 0.35355338, %v3356_v17  ;;  %v5018_v52 = vpop.f32.mrf.mxu1 }
 0xa01   :  { %v5024_v54 = vpop.f32.mrf.mxu0  ;;  %v3646_v55 = vsel %vm1027_vm2, %v3638_v62, -inf }
 0xa02   :  { %v3649_v9 = vsel %vm1027_vm2, %v3639_v48, -inf  ;;  %3647 = vmax.xlane.f32.xlu1 %v3646_v55  ;;  %v3313_v51 = vpop.f32.mrf.mxu1 }
 0xa03   :  { %3650 = vmax.xlane.f32.xlu0 %v3649_v9  ;;  %v3359_v41 = vpop.f32.mrf.mxu0 }
 0xa04   :  { %v5019_v40 = vpop.f32.mrf.mxu1 }
 0xa05   :  { %v5025_v44 = vpop.f32.mrf.mxu0 }
 0xa0c   :  { %v3402_v58 = vpop.f32.mrf.mxu1  ;;  %v3448_v45 = vpop.f32.mrf.mxu0 }
 0xa0d   :  { %v3640_v46 = vmul.f32 0.35355338, %v3402_v58  ;;  %v3641_v60 = vmul.f32 0.35355338, %v3448_v45 }
 0xa0e   :  { %v5030_v61 = vpop.f32.mrf.mxu1  ;;  %v5036_v19 = vpop.f32.mrf.mxu0 }
 0xa0f   :  { %v3655_v15 = vsel %vm1027_vm2, %v3641_v60, -inf  ;;  %v3652_v23 = vsel %vm1027_vm2, %v3640_v46, -inf }
 0xa10   :  { %v3451_v0 = vpop.f32.mrf.mxu0  ;;  %3656 = vmax.xlane.f32.xlu1 %v3655_v15  ;;  %3653 = vmax.xlane.f32.xlu0 %v3652_v23  ;;  %v3405_v56 = vpop.f32.mrf.mxu1 }
 0xa12   :  { %v5031_v50 = vpop.f32.mrf.mxu1  ;;  %v5037_v57 = vpop.f32.mrf.mxu0 }
 0xa14   :  { %v3494_v53 = vpop.f32.mrf.mxu1  ;;  %v3540_v59 = vpop.f32.mrf.mxu0 }
 0xa15   :  { %v3642_v2 = vmul.f32 0.35355338, %v3494_v53  ;;  %v3643_v3 = vmul.f32 0.35355338, %v3540_v59 }
 0xa16   :  { %v5042_v11 = vpop.f32.mrf.mxu1  ;;  %v5048_v21 = vpop.f32.mrf.mxu0 }
 0xa17   :  { %v3661_v34 = vsel %vm1027_vm2, %v3643_v3, -inf  ;;  %v3658_v5 = vsel %vm1027_vm2, %v3642_v2, -inf }
 0xa18   :  { %3662 = vmax.xlane.f32.xlu1 %v3661_v34  ;;  %v3543_v6 = vpop.f32.mrf.mxu0  ;;  %3659 = vmax.xlane.f32.xlu0 %v3658_v5  ;;  %v3497_v10 = vpop.f32.mrf.mxu1 }
 0xa1a   :  { %v5043_v20 = vpop.f32.mrf.mxu1  ;;  %v5049_v47 = vpop.f32.mrf.mxu0 }
 0xa1c   :  { %v3586_v16 = vpop.f32.mrf.mxu1  ;;  %v3632_v30 = vpop.f32.mrf.mxu0 }
 0xa1d   :  { %v6104_v31 = vmul.f32 0.35355338, %v3586_v16  ;;  %v3645_v4 = vmul.f32 0.35355338, %v3632_v30 }
 0xa1e   :  { %v5054_v27 = vpop.f32.mrf.mxu1  ;;  %v5060_v28 = vpop.f32.mrf.mxu0 }
 0xa1f   :  { %v3667_v33 = vsel %vm1027_vm2, %v3645_v4, -inf  ;;  %v3664_v36 = vsel %vm1027_vm2, %v6104_v31, -inf }
 0xa20   :  { %3668 = vmax.xlane.f32.xlu1 %v3667_v33  ;;  %v3635_v43 = vpop.f32.mrf.mxu0  ;;  %3665 = vmax.xlane.f32.xlu0 %v3664_v36  ;;  %v3589_v26 = vpop.f32.mrf.mxu1  ;;  %v3265_v36 = vpack.c.bf16 %v6074_v25, %v6074_v25 }
 0xa21   :  { %v3264_v26 = vpack.c.bf16 %v6072_v13, %v6072_v13 }
 0xa22   :  { %v5055_v32 = vpop.f32.mrf.mxu1  ;;  %v5061_v14 = vpop.f32.mrf.mxu0 }
 0xa31   :  { %2972 = vrot.lane.b32.xlu1 %v5866_v12, %s5311_s29 }
 0xa36   :  { %2968 = vrot.lane.b32.xlu0 %v5847_v24, %s5311_s29 }
 0xa8b   :  { %v3648_v38 = vpop.xlane.xlu1 %3647 }
 0xa8c   :  { %v3651_v22 = vpop.xlane.xlu0 %3650  ;;  %v3670_v17 = vsub.f32 %v3638_v62, %v3648_v38 }
 0xa8d   :  { %v3671_v39 = vsub.f32 %v3639_v48, %v3651_v22  ;;  %v3884_v22 = vsel %vm1503_vm3, %v3265_v36, 0 }
 0xa8e   :  { %v3678_v54 = vmul.f32 1.442695, %v3670_v17 }
 0xa8f   :  { %v3680_v52 = vmul.f32 1.442695, %v3671_v39  ;;  %v3838_v39 = vsel %vm1503_vm3, %v3264_v26, 0 }
 0xa91   :  { %5238 = vpow2.f32 %v3680_v52 }
 0xa92   :  { %5240 = vpow2.f32 %v3678_v54 }
 0xa99   :  { %v3654_v9 = vpop.xlane.xlu0 %3653  ;;  %v3657_v55 = vpop.xlane.xlu1 %3656 }
 0xa9a   :  { %v3672_v41 = vsub.f32 %v3640_v46, %v3654_v9  ;;  %v3673_v51 = vsub.f32 %v3641_v60, %v3657_v55 }
 0xa9c   :  { %v3682_v40 = vmul.f32 1.442695, %v3672_v41  ;;  %v3684_v44 = vmul.f32 1.442695, %v3673_v51 }
 0xa9e   :  { %5242 = vpow2.f32 %v3682_v40  ;;  %v5239_v58 = vpop.eup %5238 }
 0xa9f   :  { %5244 = vpow2.f32 %v3684_v44  ;;  %v5241_v12 = vpop.eup %5240  ;;  %v3697_v24 = vsel %vm1027_vm2, %v5239_v58, 0.0 }
 0xaa0   :  { %3698 = vadd.xlane.f32.xlu1 %v3697_v24  ;;  %v3694_v62 = vsel %vm1027_vm2, %v5241_v12, 0.0 }
 0xaa1   :  { %v3660_v45 = vpop.xlane.xlu0 %3659  ;;  %v3663_v61 = vpop.xlane.xlu1 %3662  ;;  %3695 = vadd.xlane.f32.xlu0 %v3694_v62 }
 0xaa2   :  { %v3674_v48 = vsub.f32 %v3642_v2, %v3660_v45  ;;  %v3675_v19 = vsub.f32 %v3643_v3, %v3663_v61 }
 0xaa4   :  { %v3686_v15 = vmul.f32 1.442695, %v3674_v48  ;;  %v3688_v23 = vmul.f32 1.442695, %v3675_v19 }
 0xaa6   :  { %5246 = vpow2.f32 %v3686_v15 }
 0xaa7   :  { %5248 = vpow2.f32 %v3688_v23 }
 0xaa9   :  { %v3669_v2 = vpop.xlane.xlu1 %3668  ;;  %v3666_v3 = vpop.xlane.xlu0 %3665 }
 0xaaa   :  { %v3677_v11 = vsub.f32 %v3645_v4, %v3669_v2  ;;  %v3676_v21 = vsub.f32 %v6104_v31, %v3666_v3 }
 0xaab   :  { %v6115_v46 = vpop.eup %5242 }
 0xaac   :  { %v6117_v60 = vpop.eup %5244  ;;  %v3700_v0 = vsel %vm1027_vm2, %v6115_v46, 0.0  ;;  %v3692_v34 = vmul.f32 1.442695, %v3677_v11  ;;  %v3690_v5 = vmul.f32 1.442695, %v3676_v21 }
 0xaad   :  { %3701 = vadd.xlane.f32.xlu1 %v3700_v0  ;;  %v3703_v56 = vsel %vm1027_vm2, %v6117_v60, 0.0  ;;  %v2969_v47 = vpop.permute.xlu0 %2968 }
 0xaae   :  { %3704 = vadd.xlane.f32.xlu0 %v3703_v56  ;;  %5250 = vpow2.f32 %v3692_v34 }
 0xaaf   :  { %5252 = vpow2.f32 %v3690_v5 }
 0xab3   :  { %v6123_v50 = vpop.eup %5246 }
 0xab4   :  { %v6125_v57 = vpop.eup %5248  ;;  %v3706_v53 = vsel %vm1027_vm2, %v6123_v50, 0.0 }
 0xab5   :  { %3707 = vadd.xlane.f32.xlu0 %v3706_v53  ;;  %v3709_v59 = vsel %vm1027_vm2, %v6125_v57, 0.0 }
 0xab6   :  { %3710 = vadd.xlane.f32.xlu1 %v3709_v59 }
 0xabb   :  { %v6136_v6 = vpop.eup %5250 }
 0xabc   :  { %v6138_v10 = vpop.eup %5252  ;;  %v3715_v20 = vsel %vm1027_vm2, %v6136_v6, 0.0 }
 0xac7   :  { %2976 = vrot.lane.b32.xlu1 %v5872_v18, %s5311_s29  ;;  %v3712_v18 = vsel %vm1027_vm2, %v6138_v10, 0.0 }
 0xacb   :  { %2980 = vrot.lane.b32.xlu0 %v5874_v63, %s5311_s29  ;;  %v2973_v63 = vpop.permute.xlu1 %2972 }
 0xaea   :  { %3716 = vadd.xlane.f32.xlu0 %v3715_v20 }
 0xaeb   :  { %3713 = vadd.xlane.f32.xlu1 %v3712_v18 }
 0xb29   :  { %v3699_v16 = vpop.xlane.xlu1 %3698 }
 0xb2a   :  { %v3696_v30 = vpop.xlane.xlu0 %3695  ;;  %5254 = vrcp.f32 %v3699_v16 }
 0xb2b   :  { %5256 = vrcp.f32 %v3696_v30 }
 0xb36   :  { %v3702_v31 = vpop.xlane.xlu1 %3701 }
 0xb37   :  { %v3705_v4 = vpop.xlane.xlu0 %3704  ;;  %5258 = vrcp.f32 %v3702_v31  ;;  %v5255_v27 = vpop.eup %5254 }
 0xb38   :  { %5260 = vrcp.f32 %v3705_v4  ;;  %v5257_v28 = vpop.eup %5256  ;;  %v3727_v33 = vmul.f32 %v5255_v27, %v5239_v58 }
 0xb39   :  { %v3726_v43 = vmul.f32 %v5257_v28, %v5241_v12 }
 0xb3a   :  { %v3735_v32 = vpack.c.bf16 %v3727_v33, %v3727_v33 }
 0xb3b   :  { %v3734_v14 = vpack.c.bf16 %v3726_v43, %v3726_v43 }
 0xb3c   :  { %5071 = vmatmul.mubr.msk.bf16.vlgmr.msra.gmra.mxu0 %vm1027_vm2, %v3735_v32 }
 0xb3d   :  { %5065 = vmatmul.mubr.msk.bf16.vlgmr.msra.gmra.mxu1 %vm1027_vm2, %v3734_v14  ;;  %5081 = vmatpush3.bf16.msra.mxu0 %v3884_v22 }
 0xb3e   :  { %v3708_v38 = vpop.xlane.xlu0 %3707  ;;  %5075 = vmatpush3.bf16.msra.mxu1 %v3838_v39  ;;  %5076 = vmatprep.mubr.msk.bf16.mxu1 %vm5306_vm0, %v5305_v1 }
 0xb3f   :  { %v3711_v17 = vpop.xlane.xlu1 %3710  ;;  %5082 = vmatprep.mubr.msk.bf16.mxu0 %vm5306_vm0, %v5305_v1  ;;  %5086 = vmatprep.subr.bf16.mxu1 %v5305_v1  ;;  %5262 = vrcp.f32 %v3708_v38 }
 0xb40   :  { %5092 = vmatprep.subr.bf16.mxu0 %v5305_v1  ;;  %5264 = vrcp.f32 %v3711_v17 }
 0xb42   :  { %v2981_v13 = vpop.permute.xlu0 %2980 }
 0xb43   :  { %v3074_v25 = vcombine.low %v2973_v63, %v2981_v13  ;;  %v3075_v52 = vcombine.high %v2973_v63, %v2981_v13  ;;  %v2977_v54 = vpop.permute.xlu1 %2976 }
 0xb44   :  { %v5259_v9 = vpop.eup %5258  ;;  %v3058_v55 = vcombine.low %v2969_v47, %v2977_v54  ;;  %v3059_v41 = vcombine.high %v2969_v47, %v2977_v54 }
 0xb45   :  { %v5261_v51 = vpop.eup %5260  ;;  %v3082_v40 = vrot.slane %v3074_v25, %v5416_v29  ;;  %v3089_v44 = vrot.slane %v3075_v52, %v5416_v29  ;;  %v3728_v58 = vmul.f32 %v5259_v9, %v6115_v46 }
 0xb46   :  { %v3066_v12 = vrot.slane %v3058_v55, %v5416_v29  ;;  %v3073_v24 = vrot.slane %v3059_v41, %v5416_v29  ;;  %v3729_v45 = vmul.f32 %v5261_v51, %v6117_v60 }
 0xb47   :  { %v3736_v61 = vpack.c.bf16 %v3728_v58, %v3728_v58 }
 0xb48   :  { %v3090_v62 = vcombine.low %v3066_v12, %v3082_v40  ;;  %v3091_v48 = vcombine.high %v3066_v12, %v3082_v40  ;;  %v3106_v19 = vcombine.low %v3073_v24, %v3089_v44  ;;  %v3107_v15 = vcombine.high %v3073_v24, %v3089_v44 }
 0xb49   :  { %5077 = vmatmul.mubr.msk.bf16.vlgmr.msra.gmra.mxu1 %vm1027_vm2, %v3736_v61  ;;  %v3737_v23 = vpack.c.bf16 %v3729_v45, %v3729_v45 }
 0xb4a   :  { %v3098_v0 = vrot.slane %v3090_v62, %v5427_v37  ;;  %v3105_v56 = vrot.slane %v3091_v48, %v5427_v37  ;;  %v3114_v46 = vrot.slane %v3106_v19, %v5427_v37  ;;  %v3121_v53 = vrot.slane %v3107_v15, %v5427_v37  ;;  %5088 = vmatprep.mubr.msk.bf16.mxu1 %vm5306_vm0, %v5305_v1 }
 0xb4b   :  { %5083 = vmatmul.mubr.msk.bf16.vlgmr.msra.gmra.mxu0 %vm1027_vm2, %v3737_v23 }
 0xb4c   :  { %v3194_v60 = vcombine.low %v3098_v0, %v3105_v56  ;;  %v4772_v59 = vcombine.high %v3098_v0, %v3105_v56  ;;  %v3210_v2 = vcombine.low %v3114_v46, %v3121_v53  ;;  %v4773_v3 = vcombine.high %v3114_v46, %v3121_v53  ;;  %5094 = vmatprep.mubr.msk.bf16.mxu0 %vm5306_vm0, %v5305_v1  ;;  %v5263_v16 = vpop.eup %5262 }
 0xb4d   :  { %v5265_v28 = vpop.eup %5264  ;;  %v3730_v22 = vmul.f32 %v5263_v16, %v6123_v50 }
 0xb4e   :  { %v3201_v11 = vrot.slane %v3194_v60, %v5416_v29  ;;  %v3209_v21 = vrot.slane %v4772_v59, %v5416_v29  ;;  %v3217_v34 = vrot.slane %v3210_v2, %v5416_v29  ;;  %v3225_v5 = vrot.slane %v4773_v3, %v5416_v29 }
 0xb4f   :  { %v3731_v38 = vmul.f32 %v5265_v28, %v6125_v57  ;;  %v3738_v52 = vpack.c.bf16 %v3730_v22, %v3730_v22 }
 0xb50   :  { %v3226_v20 = vcombine.low %v3201_v11, %v3209_v21  ;;  %v3242_v18 = vcombine.low %v3217_v34, %v3225_v5  ;;  %v3227_v63 = vcombine.high %v3201_v11, %v3209_v21  ;;  %v3243_v47 = vcombine.high %v3217_v34, %v3225_v5 }
 0xb51   :  { %v3739_v54 = vpack.c.bf16 %v3731_v38, %v3731_v38 }
 0xb52   :  { %v3234_v30 = vrot.slane %v3226_v20, %v5427_v37  ;;  %v3250_v31 = vrot.slane %v3242_v18, %v5427_v37  ;;  %v3241_v4 = vrot.slane %v3227_v63, %v5427_v37  ;;  %v3257_v27 = vrot.slane %v3243_v47, %v5427_v37 }
 0xb54   :  { %v3258_v33 = vcombine.low %v3234_v30, %v3250_v31  ;;  %v3259_v36 = vcombine.high %v3234_v30, %v3250_v31  ;;  %v3260_v43 = vcombine.low %v3241_v4, %v3257_v27  ;;  %v3261_v26 = vcombine.high %v3241_v4, %v3257_v27 }
 0xb56   :  { %v3266_v32 = vpack.c.bf16 %v3258_v33, %v3258_v33  ;;  %v3267_v14 = vpack.c.bf16 %v3259_v36, %v3259_v36  ;;  %v3268_v13 = vpack.c.bf16 %v3260_v43, %v3260_v43  ;;  %v3269_v25 = vpack.c.bf16 %v3261_v26, %v3261_v26 }
 0xb58   :  { %v3930_v39 = vsel %vm1503_vm3, %v3266_v32, 0  ;;  %v3976_v17 = vsel %vm1503_vm3, %v3267_v14, 0  ;;  %v4022_v50 = vsel %vm1503_vm3, %v3268_v13, 0  ;;  %v4068_v57 = vsel %vm1503_vm3, %v3269_v25, 0 }
 0xb59   :  { %5087 = vmatpush3.bf16.msra.mxu1 %v3930_v39  ;;  %5093 = vmatpush3.bf16.msra.mxu0 %v3976_v17 }
 0xb5a   :  { %5098 = vmatprep.subr.bf16.mxu1 %v5305_v1  ;;  %5104 = vmatprep.subr.bf16.mxu0 %v5305_v1 }
 0xb5c   :  { %5089 = vmatmul.mubr.msk.bf16.vlgmr.msra.gmra.mxu1 %vm1027_vm2, %v3738_v52  ;;  %5095 = vmatmul.mubr.msk.bf16.vlgmr.msra.gmra.mxu0 %vm1027_vm2, %v3739_v54 }
 0xb5d   :  { %5099 = vmatpush3.bf16.msra.mxu1 %v4022_v50  ;;  %5105 = vmatpush3.bf16.msra.mxu0 %v4068_v57 }
 0xb5e   :  { %5100 = vmatprep.mubr.msk.bf16.mxu1 %vm5306_vm0, %v5305_v1  ;;  %5106 = vmatprep.mubr.msk.bf16.mxu0 %vm5306_vm0, %v5305_v1 }
 0xb5f   :  { %5110 = vmatprep.subr.bf16.mxu1 %v5305_v1  ;;  %5118 = vmatprep.subr.bf16.mxu0 %v5305_v1 }
 0xb73   :  { %v3717_v9 = vpop.xlane.xlu0 %3716 }
 0xb74   :  { %5266 = vrcp.f32 %v3717_v9  ;;  %v3714_v55 = vpop.xlane.xlu1 %3713 }
 0xb75   :  { %5268 = vrcp.f32 %v3714_v55 }
 0xb81   :  { %v5267_v41 = vpop.eup %5266 }
 0xb82   :  { %v5269_v51 = vpop.eup %5268  ;;  %v3733_v40 = vmul.f32 %v5267_v41, %v6136_v6 }
 0xb83   :  { %v3732_v44 = vmul.f32 %v5269_v51, %v6138_v10 }
 0xb84   :  { %v3741_v58 = vpack.c.bf16 %v3733_v40, %v3733_v40 }
 0xb85   :  { %v3740_v12 = vpack.c.bf16 %v3732_v44, %v3732_v44 }
 0xb86   :  { %5107 = vmatmul.mubr.msk.bf16.vlgmr.msra.gmra.mxu0 %vm1027_vm2, %v3741_v58 }
 0xb87   :  { %5101 = vmatmul.mubr.msk.bf16.vlgmr.msra.gmra.mxu1 %vm1027_vm2, %v3740_v12  ;;  %5122 = vmatprep.mubr.msk.bf16.mxu0 %vm5306_vm0, %v5305_v1 }
 0xb88   :  { %5114 = vmatprep.mubr.msk.bf16.mxu1 %vm5306_vm0, %v5305_v1 }
 0xbfc   :  { %v3828_v24 = vpop.f32.mrf.mxu0 }
 0xbfd   :  { %v3782_v45 = vpop.f32.mrf.mxu1 }
 0xbfe   :  { %v5072_v61 = vpop.f32.mrf.mxu0 }
 0xbff   :  { %v5066_v62 = vpop.f32.mrf.mxu1 }
 0xc00   :  { %v3831_v48 = vpop.f32.mrf.mxu0 }
 0xc01   :  { %v3785_v6 = vpop.f32.mrf.mxu1 }
 0xc02   :  { %v5073_v19 = vpop.f32.mrf.mxu0 }
 0xc03   :  { %v5067_v10 = vpop.f32.mrf.mxu1 }
 0xc09   :  { %v3874_v15 = vpop.f32.mrf.mxu1 }
 0xc0a   :  { %v4110_v23 = vcombine.low %v3782_v45, %v3874_v15  ;;  %v4111_v0 = vcombine.high %v3782_v45, %v3874_v15 }
 0xc0b   :  { %v3920_v56 = vpop.f32.mrf.mxu0  ;;  %v5078_v46 = vpop.f32.mrf.mxu1 }
 0xc0c   :  { %v4118_v53 = vrot.slane %v4110_v23, %v5416_v29  ;;  %v4125_v60 = vrot.slane %v4111_v0, %v5416_v29  ;;  %v4126_v59 = vcombine.low %v3828_v24, %v3920_v56  ;;  %v4127_v2 = vcombine.high %v3828_v24, %v3920_v56 }
 0xc0d   :  { %v5084_v3 = vpop.f32.mrf.mxu0  ;;  %v3877_v11 = vpop.f32.mrf.mxu1 }
 0xc0e   :  { %v4134_v21 = vrot.slane %v4126_v59, %v5416_v29  ;;  %v4141_v34 = vrot.slane %v4127_v2, %v5416_v29 }
 0xc0f   :  { %v3923_v5 = vpop.f32.mrf.mxu0  ;;  %v5079_v20 = vpop.f32.mrf.mxu1 }
 0xc10   :  { %v4142_v18 = vcombine.low %v4118_v53, %v4134_v21  ;;  %v4143_v63 = vcombine.high %v4118_v53, %v4134_v21  ;;  %v4158_v47 = vcombine.low %v4125_v60, %v4141_v34  ;;  %v4159_v16 = vcombine.high %v4125_v60, %v4141_v34 }
 0xc11   :  { %v5085_v30 = vpop.f32.mrf.mxu0 }
 0xc12   :  { %v4150_v31 = vrot.slane %v4142_v18, %v5427_v37  ;;  %v4157_v4 = vrot.slane %v4143_v63, %v5427_v37  ;;  %v4166_v27 = vrot.slane %v4158_v47, %v5427_v37  ;;  %v4173_v28 = vrot.slane %v4159_v16, %v5427_v37 }
 0xc14   :  { %v4246_v33 = vcombine.low %v4150_v31, %v4157_v4  ;;  %v4790_v36 = vcombine.high %v4150_v31, %v4157_v4  ;;  %v4262_v43 = vcombine.low %v4166_v27, %v4173_v28  ;;  %v4791_v26 = vcombine.high %v4166_v27, %v4173_v28 }
 0xc16   :  { %v4253_v32 = vrot.slane %v4246_v33, %v5416_v29  ;;  %v4261_v14 = vrot.slane %v4790_v36, %v5416_v29  ;;  %v4269_v22 = vrot.slane %v4262_v43, %v5416_v29  ;;  %v4277_v38 = vrot.slane %v4791_v26, %v5416_v29  ;;  %v5192_v33 = vld [vmem:[%s6355_s2 + $0x18] sm:$0xff]  }
 0xc17   :  { %5111 = vmatpush3.bf16.msra.mxu1 %v5192_v33 }
 0xc18   :  { %v4279_v39 = vcombine.high %v4253_v32, %v4261_v14  ;;  %v4295_v17 = vcombine.high %v4269_v22, %v4277_v38  ;;  %v4278_v13 = vcombine.low %v4253_v32, %v4261_v14  ;;  %v4294_v25 = vcombine.low %v4269_v22, %v4277_v38  ;;  %5112 = vmatprep.subr.bf16.mxu1 %v5305_v1 }
 0xc1a   :  { %v6219_v52 = vrot.slane %v4279_v39, %v5427_v37  ;;  %v6222_v54 = vrot.slane %v4295_v17, %v5427_v37  ;;  %v6225_v50 = vrot.slane %v4278_v13, %v5427_v37  ;;  %v6228_v57 = vrot.slane %v4294_v25, %v5427_v37 }
 0xc1c   :  { %v3966_v9 = vpop.f32.mrf.mxu1  ;;  %v4012_v55 = vpop.f32.mrf.mxu0  ;;  %v4312_v41 = vcombine.low %v6219_v52, %v6222_v54  ;;  %v4310_v51 = vcombine.low %v6225_v50, %v6228_v57  ;;  %v4311_v40 = vcombine.high %v6225_v50, %v6228_v57  ;;  %v4313_v44 = vcombine.high %v6219_v52, %v6222_v54  ;;  %v5193_v54 = vld [vmem:[%s6355_s2 + $0x10] sm:$0xff]   ;;  %v6281_v57 = vld [vmem:[%s6356_s3] sm:$0xff] }
 0xc1d   :  { %5113 = vmatpush3.bf16.msra.mxu1 %v5193_v54  ;;  %v4415_v50 = vsub.s32 3, %v5367_v7 }
 0xc1e   :  { %v5090_v58 = vpop.f32.mrf.mxu1  ;;  %v5096_v12 = vpop.f32.mrf.mxu0  ;;  %5126 = vmatprep.subr.bf16.mxu1 %v5305_v1 }
 0xc20   :  { %v3969_v24 = vpop.f32.mrf.mxu1  ;;  %v4015_v45 = vpop.f32.mrf.mxu0 }
 0xc22   :  { %v5091_v61 = vpop.f32.mrf.mxu1  ;;  %v5097_v62 = vpop.f32.mrf.mxu0 }
 0xc46   :  { %v4104_v48 = vpop.f32.mrf.mxu0 }
 0xc47   :  { %v4058_v6 = vpop.f32.mrf.mxu1  ;;  %v4194_v19 = vcombine.low %v4012_v55, %v4104_v48  ;;  %v4195_v10 = vcombine.high %v4012_v55, %v4104_v48 }
 0xc48   :  { %v4178_v15 = vcombine.low %v3966_v9, %v4058_v6  ;;  %v4179_v23 = vcombine.high %v3966_v9, %v4058_v6  ;;  %v5108_v0 = vpop.f32.mrf.mxu0 }
 0xc49   :  { %v4202_v56 = vrot.slane %v4194_v19, %v5416_v29  ;;  %v4209_v46 = vrot.slane %v4195_v10, %v5416_v29  ;;  %v5102_v53 = vpop.f32.mrf.mxu1 }
 0xc4a   :  { %v4186_v60 = vrot.slane %v4178_v15, %v5416_v29  ;;  %v4193_v59 = vrot.slane %v4179_v23, %v5416_v29  ;;  %v4107_v2 = vpop.f32.mrf.mxu0 }
 0xc4b   :  { %v4061_v3 = vpop.f32.mrf.mxu1 }
 0xc4c   :  { %v4210_v11 = vcombine.low %v4186_v60, %v4202_v56  ;;  %v4211_v21 = vcombine.high %v4186_v60, %v4202_v56  ;;  %v4226_v34 = vcombine.low %v4193_v59, %v4209_v46  ;;  %v4227_v5 = vcombine.high %v4193_v59, %v4209_v46  ;;  %v5109_v20 = vpop.f32.mrf.mxu0 }
 0xc4d   :  { %v5103_v18 = vpop.f32.mrf.mxu1 }
 0xc4e   :  { %v4218_v63 = vrot.slane %v4210_v11, %v5427_v37  ;;  %v4225_v47 = vrot.slane %v4211_v21, %v5427_v37  ;;  %v4234_v16 = vrot.slane %v4226_v34, %v5427_v37  ;;  %v4241_v30 = vrot.slane %v4227_v5, %v5427_v37 }
 0xc50   :  { %v4314_v31 = vcombine.low %v4218_v63, %v4225_v47  ;;  %v4792_v4 = vcombine.high %v4218_v63, %v4225_v47  ;;  %v4330_v27 = vcombine.low %v4234_v16, %v4241_v30  ;;  %v4793_v28 = vcombine.high %v4234_v16, %v4241_v30 }
 0xc52   :  { %v4321_v36 = vrot.slane %v4314_v31, %v5416_v29  ;;  %v4329_v43 = vrot.slane %v4792_v4, %v5416_v29  ;;  %v4337_v26 = vrot.slane %v4330_v27, %v5416_v29  ;;  %v4345_v32 = vrot.slane %v4793_v28, %v5416_v29 }
 0xc54   :  { %v4347_v14 = vcombine.high %v4321_v36, %v4329_v43  ;;  %v4363_v22 = vcombine.high %v4337_v26, %v4345_v32  ;;  %v4346_v38 = vcombine.low %v4321_v36, %v4329_v43  ;;  %v4362_v39 = vcombine.low %v4337_v26, %v4345_v32  ;;  %v5195_v36 = vld [vmem:[%s6354_s1 + $0x20] sm:$0xff]   ;;  %v5196_v43 = vld [vmem:[%s6355_s2 + $0x48] sm:$0xff]   ;;  %v5198_v32 = vld [vmem:[%s6355_s2 + $0x38] sm:$0xff]  }
 0xc55   :  { %v5197_v26 = vld [vmem:[%s6355_s2 + $0x40] sm:$0xff]  }
 0xc56   :  { %v4361_v17 = vrot.slane %v4347_v14, %v5427_v37  ;;  %v4377_v13 = vrot.slane %v4363_v22, %v5427_v37  ;;  %v4354_v25 = vrot.slane %v4346_v38, %v5427_v37  ;;  %v4370_v52 = vrot.slane %v4362_v39, %v5427_v37 }
 0xc58   :  { %v4380_v29 = vcombine.low %v4361_v17, %v4377_v13  ;;  %v4379_v9 = vcombine.high %v4354_v25, %v4370_v52  ;;  %v4378_v55 = vcombine.low %v4354_v25, %v4370_v52  ;;  %v4381_v24 = vcombine.high %v4361_v17, %v4377_v13 }
 0xc59   :  { %v4503_v25 = vsub.s32 7, %v5367_v7 }
 0xc5a   :  { %v5176_v58 = vpack.i.bf16 %v4380_v29, %v4312_v41  ;;  %v5171_v12 = vpack.i.bf16 %v4379_v9, %v4311_v40  ;;  %v5181_v45 = vpack.i.bf16 %v4381_v24, %v4313_v44 }
 0xc5b   :  { %v4504_v29 = vrot.slane %v6281_v57, %v4503_v25 }
 0xc5c   :  { %5177 = vrot.lane.b32.xlu1 %v5176_v58, %s5314_s8  ;;  %5172 = vrot.lane.b32.xlu0 %v5171_v12, %s5315_s9 }
 0xc60   :  { %5182 = vrot.lane.b32.xlu1 %v5181_v45, %s5316_s10 }
 0xcce   :  { %v5178_v37 = vpop.permute.xlu1 %5177  ;;  %v5173_v61 = vpop.permute.xlu0 %5172 }
 0xccf   :  { %v5175_v62 = vunpack.i.h.bf16 %v5173_v61  ;;  %v5174_v48 = vunpack.i.l.bf16 %v5173_v61  ;;  %v5180_v6 = vunpack.i.h.bf16 %v5178_v37  ;;  %v5179_v19 = vunpack.i.l.bf16 %v5178_v37 }
 0xcd1   :  { %v4406_v41 = vsel %vm1027_vm2, %v4310_v51, %v5174_v48  ;;  %v4407_v40 = vsel %vm1027_vm2, %v4378_v55, %v5175_v62  ;;  %v4416_v51 = vrot.slane %v6281_v57, %v4415_v50  ;;  %v6316_v55 = vld [vmem:[%s6356_s3 + $0x8] sm:$0xf]  ;;  %v5199_v48 = vld [vmem:[%s6355_s2 + $0x30] sm:$0xff]  }
 0xcd2   :  { %v5183_v10 = vpop.permute.xlu1 %5182  ;;  %v4408_v44 = vsel %vm2167_vm4, %v4406_v41, %v5179_v19  ;;  %v4409_v0 = vsel %vm2167_vm4, %v4407_v40, %v5180_v6  ;;  %v4510_v58 = vrot.slane %v6316_v55, %v2176_v49  ;;  %v5200_v6 = vld [vmem:[%s6355_s2 + $0x28] sm:$0xff]   ;;  %v5201_v49 = vld [vmem:[%s6355_s2 + $0x20] sm:$0xff]   ;;  %v4516_v19 = vsub.s32 4, %v5367_v7  ;;  %s5317_s2 = smov [#allocation2]  }
 0xcd3   :  { %v5185_v15 = vunpack.i.h.bf16 %v5183_v10  ;;  %v5184_v23 = vunpack.i.l.bf16 %v5183_v10  ;;  %s4709_s23 = sshll.u32 %s5317_s2, 4  ;;  %s4710_s23 = int_to_ptr.vmem [resolvable:$true] %s4709_s23 }
 0xcd4   :  { %v4517_v41 = vrot.slane %v6281_v57, %v4516_v19  ;;  %s5283_s24 = scalar_lea.vmem %s4710_s23, 256  ;;  %p5288_p1 = scmp.lt.s32.totalorder %s4710_s23, %s4710_s23 }
 0xcd5   :  { %v4410_v56 = vsel %vm2170_vm5, %v4408_v44, %v5184_v23  ;;  %v4411_v46 = vsel %vm2170_vm5, %v4409_v0, %v5185_v15  ;;  %p5284_p0 = scmp.ne.s32.totalorder %s4710_s23, %s5283_s24  ;;  %p5289_p2 = scmp.lt.s32.totalorder %s5283_s24, %s5283_s24 }
 0xcd6   :  { %v4412_v53 = vpack.c.bf16 %v4411_v46, %v4410_v56 }
 0xcd7   :  { %p5290_p3 = por %p5289_p2, %p5288_p1 }
 0xcd8   :  { %5115 = vmatmul.mubr.msk.bf16.vlgmr.msra.gmra.mxu1 %vm74_vm1, %v4412_v53 }
 0xcd9   :  { %5138 = vmatprep.mubr.msk.bf16.mxu1 %vm5306_vm0, %v5305_v1  ;;  %5127 = vmatpush3.bf16.msra.mxu1 %v5196_v43  ;;  %p5291_p4 = pnand %p5290_p3, %p5284_p0 }
 0xcda   :  { %5128 = vmatprep.subr.bf16.mxu1 %v5305_v1 }
 0xcdd   :  { %5129 = vmatpush3.bf16.msra.mxu1 %v5197_v26 }
 0xcde   :  { %5130 = vmatprep.subr.bf16.mxu1 %v5305_v1 }
 0xce1   :  { %5131 = vmatpush3.bf16.msra.mxu1 %v5198_v32 }
 0xce2   :  { %5132 = vmatprep.subr.bf16.mxu1 %v5305_v1 }
 0xce5   :  { %5133 = vmatpush3.bf16.msra.mxu1 %v5199_v48 }
 0xce6   :  { %5134 = vmatprep.subr.bf16.mxu1 %v5305_v1 }
 0xce9   :  { %5135 = vmatpush3.bf16.msra.mxu1 %v5200_v6 }
 0xcea   :  { %5136 = vmatprep.subr.bf16.mxu1 %v5305_v1 }
 0xced   :  { %5137 = vmatpush3.bf16.msra.mxu1 %v5201_v49 }
 0xd98   :  { %v4466_v60 = vpop.f32.mrf.mxu1 }
 0xd99   :  { %v4467_v59 = vadd.f32 %v4466_v60, %v4416_v51 }
 0xd9a   :  { %v5116_v2 = vpop.f32.mrf.mxu1 }
 0xd9b   :  { %v4473_v3 = vadd.f32 %v4467_v59, %v5832_v42 }
 0xd9c   :  { %v4469_v11 = vpop.f32.mrf.mxu1 }
 0xd9d   :  { %v4470_v21 = vadd.f32 %v4469_v11, %v4416_v51  ;;  %v4475_v34 = vsel %vm74_vm1, %v4473_v3, 0.0  ;;  %v4579_v51 = vsub.s32 5, %v5367_v7 }
 0xd9e   :  { %4476 = vadd.xlane.f32.xlu0 %v4475_v34  ;;  %v5117_v5 = vpop.f32.mrf.mxu1 }
 0xd9f   :  { %v4474_v20 = vadd.f32 %v4470_v21, %v5834_v35  ;;  %v5194_v35 = vld [vmem:[%s6354_s1 + $0x28] sm:$0xff]  }
 0xda0   :  { %5119 = vmatpush3.bf16.msra.mxu0 %v5194_v35 }
 0xda1   :  { %v4478_v18 = vsel %vm74_vm1, %v4474_v20, 0.0  ;;  %5120 = vmatprep.subr.bf16.mxu0 %v5305_v1  ;;  %v4580_v1 = vrot.slane %v6281_v57, %v4579_v51 }
 0xda2   :  { %4479 = vadd.xlane.f32.xlu1 %v4478_v18 }
 0xda4   :  { %5121 = vmatpush3.bf16.msra.mxu0 %v5195_v36 }
 0xe27   :  { %v4477_v63 = vpop.xlane.xlu0 %4476 }
 0xe28   :  { %v4481_v47 = vmul.f32 0.03125, %v4477_v63 }
 0xe2a   :  { %v4483_v16 = vsub.f32 %v4473_v3, %v4481_v47 }
 0xe2b   :  { %v4480_v30 = vpop.xlane.xlu1 %4479 }
 0xe2c   :  { %v4482_v31 = vmul.f32 0.03125, %v4480_v30  ;;  %v4485_v4 = vmul.f32 %v4483_v16, %v4483_v16 }
 0xe2e   :  { %v4484_v27 = vsub.f32 %v4474_v20, %v4482_v31  ;;  %v4487_v42 = vsel %vm74_vm1, %v4485_v4, 0.0 }
 0xe2f   :  { %4488 = vadd.xlane.f32.xlu0 %v4487_v42 }
 0xe30   :  { %v4486_v28 = vmul.f32 %v4484_v27, %v4484_v27 }
 0xe32   :  { %v4490_v33 = vsel %vm74_vm1, %v4486_v28, 0.0 }
 0xe33   :  { %4491 = vadd.xlane.f32.xlu0 %v4490_v33 }
 0xeb8   :  { %v4489_v14 = vpop.xlane.xlu0 %4488 }
 0xeb9   :  { %v4493_v22 = vmul.f32 0.03125, %v4489_v14  ;;  %v4693_v14 = vrot.slane %v6316_v55, %v60_v8 }
 0xebb   :  { %v4495_v38 = vadd.f32 1e-05, %v4493_v22 }
 0xebc   :  { %v4492_v39 = vpop.xlane.xlu0 %4491 }
 0xebd   :  { %5270 = vrsqrt.f32 %v4495_v38  ;;  %v4494_v17 = vmul.f32 0.03125, %v4492_v39  ;;  %v4699_v38 = vrot.slane %v6316_v55, %v4415_v50 }
 0xebf   :  { %v4496_v13 = vadd.f32 1e-05, %v4494_v17 }
 0xec1   :  { %5272 = vrsqrt.f32 %v4496_v13 }
 0xeca   :  { %v5271_v52 = vpop.eup %5270 }
 0xecb   :  { %v4499_v54 = vmul.f32 %v5271_v52, %v4483_v16 }
 0xecd   :  { %v4505_v24 = vmul.f32 %v4504_v29, %v4499_v54 }
 0xece   :  { %v5273_v9 = vpop.eup %5272 }
 0xecf   :  { %v4500_v12 = vmul.f32 %v5273_v9, %v4484_v27  ;;  %v4511_v37 = vadd.f32 %v4510_v58, %v4505_v24 }
 0xed1   :  { %v4506_v45 = vmul.f32 %v4504_v29, %v4500_v12 }
 0xed3   :  { %v4512_v61 = vadd.f32 %v4510_v58, %v4506_v45 }
 0xed5   :  { %v4513_v62 = vpack.c.bf16 %v4512_v61, %v4511_v37 }
 0xed7   :  { %5123 = vmatmul.mubr.msk.bf16.vlgmr.msra.gmra.mxu0 %vm74_vm1, %v4513_v62 }
 0xf97   :  { %v4567_v40 = vpop.f32.mrf.mxu0 }
 0xf98   :  { %v4568_v15 = vadd.f32 %v4567_v40, %v4517_v41 }
 0xf99   :  { %v5124_v10 = vpop.f32.mrf.mxu0 }
 0xf9a   :  { %v4574_v56 = vmax.f32 %v4568_v15, 0.0 }
 0xf9b   :  { %v4570_v23 = vpop.f32.mrf.mxu0 }
 0xf9c   :  { %v4571_v44 = vadd.f32 %v4570_v23, %v4517_v41 }
 0xf9d   :  { %v5125_v0 = vpop.f32.mrf.mxu0 }
 0xf9e   :  { %v4575_v46 = vmax.f32 %v4571_v44, 0.0 }
 0xfa0   :  { %v4576_v53 = vpack.c.bf16 %v4575_v46, %v4574_v56 }
 0xfa2   :  { %5139 = vmatmul.mubr.msk.bf16.vlgmr.msra.gmra.mxu1 %vm4617_vm6, %v4576_v53 }
0x1062   :  { %v4655_v60 = vpop.f32.mrf.mxu1 }
0x1063   :  { %v4656_v59 = vadd.f32 %v4655_v60, %v4580_v1 }
0x1064   :  { %v5140_v2 = vpop.f32.mrf.mxu1 }
0x1065   :  { %v4662_v3 = vadd.f32 %v4656_v59, %v4511_v37 }
0x1066   :  { %v4658_v11 = vpop.f32.mrf.mxu1 }
0x1067   :  { %v4659_v21 = vadd.f32 %v4658_v11, %v4580_v1  ;;  %v4664_v34 = vsel %vm74_vm1, %v4662_v3, 0.0 }
0x1068   :  { %4665 = vadd.xlane.f32.xlu1 %v4664_v34  ;;  %v5141_v5 = vpop.f32.mrf.mxu1 }
0x1069   :  { %v4663_v20 = vadd.f32 %v4659_v21, %v4512_v61 }
0x106b   :  { %v4667_v18 = vsel %vm74_vm1, %v4663_v20, 0.0 }
0x106c   :  { %4668 = vadd.xlane.f32.xlu0 %v4667_v18 }
0x10f1   :  { %v4666_v63 = vpop.xlane.xlu1 %4665 }
0x10f2   :  { %v4670_v47 = vmul.f32 0.03125, %v4666_v63 }
0x10f4   :  { %v4672_v16 = vsub.f32 %v4662_v3, %v4670_v47 }
0x10f5   :  { %v4669_v30 = vpop.xlane.xlu0 %4668 }
0x10f6   :  { %v4671_v31 = vmul.f32 0.03125, %v4669_v30  ;;  %v4674_v57 = vmul.f32 %v4672_v16, %v4672_v16 }
0x10f8   :  { %v4673_v4 = vsub.f32 %v4663_v20, %v4671_v31  ;;  %v4676_v27 = vsel %vm74_vm1, %v4674_v57, 0.0 }
0x10f9   :  { %4677 = vadd.xlane.f32.xlu1 %v4676_v27 }
0x10fa   :  { %v4675_v42 = vmul.f32 %v4673_v4, %v4673_v4 }
0x10fc   :  { %v4679_v28 = vsel %vm74_vm1, %v4675_v42, 0.0 }
0x10fd   :  { %4680 = vadd.xlane.f32.xlu0 %v4679_v28 }
0x1182   :  { %v4678_v33 = vpop.xlane.xlu1 %4677 }
0x1183   :  { %v4682_v35 = vmul.f32 0.03125, %v4678_v33 }
0x1185   :  { %v4684_v36 = vadd.f32 1e-05, %v4682_v35 }
0x1186   :  { %v4681_v43 = vpop.xlane.xlu0 %4680 }
0x1187   :  { %5274 = vrsqrt.f32 %v4684_v36  ;;  %v4683_v26 = vmul.f32 0.03125, %v4681_v43 }
0x1189   :  { %v4685_v32 = vadd.f32 1e-05, %v4683_v26 }
0x118b   :  { %5276 = vrsqrt.f32 %v4685_v32 }
0x1194   :  { %v5275_v22 = vpop.eup %5274 }
0x1195   :  { %v4688_v39 = vmul.f32 %v5275_v22, %v4672_v16 }
0x1197   :  { %v4694_v17 = vmul.f32 %v4693_v14, %v4688_v39 }
0x1198   :  { %v5277_v13 = vpop.eup %5276 }
0x1199   :  { %v4689_v25 = vmul.f32 %v5277_v13, %v4673_v4  ;;  %v4700_v52 = vadd.f32 %v4699_v38, %v4694_v17 }
0x119b   :  { %v4695_v54 = vmul.f32 %v4693_v14, %v4689_v25  ;;  %4702 = vst.msk [vmem:[#allocation2] sm:$0xff] %vm74_vm1, %v4700_v52 }
0x119d   :  { %v4701_v29 = vadd.f32 %v4699_v38, %v4695_v54 }
0x119f   :  { %4703 = vst.msk [vmem:[#allocation2 + $0x8] sm:$0xff] %vm74_vm1, %v4701_v29 }
0x11a0   :  { %5294 = shalt.err (!%p5291_p4)
}
0x11a1   :  { %s5318_s30 = smov 128  }
0x11a2   :  { %4715 = dma.vmem_to_hbm [thread:$0]  %s4710_s23, 256, %s6357_s4, [#allocation3], %s5318_s30, %s5318_s30, %s5315_s9  }
0x11a3   :  { %5303 = dma.done.wait [#allocation3], 256  }
0x11a4   :  { %5304 = vsyncadd [#allocation3], 4294967040 }
0x11a5   :  { %4719 = vsyncpa [#allocation3], 1 }

</bundles_post_ra>
